<compile_context>
chip_gen: v6e
topology: v6e:2x2x1
jax: 0.10.0
libtpu: 0.0.40
codegen_flags: <defaults>
</compile_context>

<pallas_src>
import functools
import math

import jax
import jax.numpy as jnp
import numpy as np
from jax import lax
from jax.experimental import pallas as pl
from jax.experimental.pallas import tpu as pltpu


# ----------------------------------------------------------------------------
# Kernel
# ----------------------------------------------------------------------------
def _generator_kernel(x_ref, w1_ref, b1_ref, w2_ref, b2_ref, w3_ref, b3_ref,
                      w4_ref, b4_ref, o_ref, *, L, bf16_mm):
    M = x_ref.shape[1]  # TB * L, lane dimension of every tile

    # Sequence-edge masks, built once and shared by all 4 layers.  Position m
    # belongs to sequence m // L at offset m % L; taps that would read across
    # a sequence boundary are zeroed (== the k=3, padding=1 zero padding).
    lane = lax.broadcasted_iota(jnp.int32, (1, M), 1)
    pos = lane % L
    mask_prev = (pos != 0).astype(jnp.float32)        # kills h[m-1] tap at pos == 0
    mask_next = (pos != (L - 1)).astype(jnp.float32)  # kills h[m+1] tap at pos == L-1

    def mm(w, h):
        # Single MXU matmul; optionally bf16 operands (f32 accumulation) for v5e.
        if bf16_mm:
            w = w.astype(jnp.bfloat16)
            h = h.astype(jnp.bfloat16)
        return jnp.dot(w, h, preferred_element_type=jnp.float32)

    def combine_taps(y, cout, b):
        # y: (3*cout, M) per-tap partial sums, tap-major [k=0; k=1; k=2].
        # out[m] = y1[m] + y0[m-1] + y2[m+1]   (edge taps masked to zero)
        y0 = y[:cout]
        y1 = y[cout:2 * cout]
        y2 = y[2 * cout:]
        return (y1
                + mask_prev * pltpu.roll(y0, shift=1, axis=1)
                + mask_next * pltpu.roll(y2, shift=M - 1, axis=1)   # == shift -1
                + b)

    x = x_ref[...]                                                  # (1, M)
    x_prev = pltpu.roll(x, shift=1, axis=1) * mask_prev
    x_next = pltpu.roll(x, shift=M - 1, axis=1) * mask_next

    # --- Layer 1: Conv1d(1 -> 64).  Cin == 1 => pure VPU broadcast multiplies.
    w1 = w1_ref[...]                                                # (64, 3)
    h = (w1[:, 0:1] * x_prev + w1[:, 1:2] * x + w1[:, 2:3] * x_next
         + b1_ref[...])                                             # (64, M)
    h = jnp.maximum(h, 0.0)

    # --- Layer 2: Conv1d(64 -> 128).  Output-stacked taps: (384,64)@(64,M).
    y = mm(w2_ref[...], h)                                          # (384, M)
    h = jnp.maximum(combine_taps(y, 128, b2_ref[...]), 0.0)         # (128, M)

    # --- Layer 3: ConvTranspose1d(128 -> 64) == flipped conv: (192,128)@(128,M).
    y = mm(w3_ref[...], h)                                          # (192, M)
    h = jnp.maximum(combine_taps(y, 64, b3_ref[...]), 0.0)          # (64, M)

    # --- Layer 4: ConvTranspose1d(64 -> 1): (3,64)@(64,M) + two 1-row rolls.
    y = mm(w4_ref[...], h)                                          # (3, M)
    out = combine_taps(y, 1, b4_ref[...])                           # (1, M)
    o_ref[...] = jnp.tanh(out)                                      # lane-dense store


# ----------------------------------------------------------------------------
# Tiling plan
# ----------------------------------------------------------------------------
def _plan_tiles(B, L, max_m=4096):
    """Returns (B_pad, TB): pad batch to B_pad, process TB sequences per step.

    Prefers the largest TB with TB | B, TB*L <= max_m and TB*L lane-aligned
    (multiple of 128) unless TB == B; among those, prefers TB with at least two
    grid steps so v7x's 2 TensorCores both get work.
    """
    cands = [tb for tb in range(B, 0, -1)
             if B % tb == 0 and tb * L <= max_m
             and ((tb * L) % 128 == 0 or tb == B)]
    if cands:
        multi = [tb for tb in cands if B // tb >= 2]
        return B, (max(multi) if (multi and B > 1) else max(cands))
    # No valid divisor: pad the batch with dummy sequences so a lane-aligned
    # tile exists (padded outputs are trimmed by the wrapper).
    g = 128 // math.gcd(L, 128)               # smallest TB with (TB*L) % 128 == 0
    tb = max(g, (max(1, max_m // L) // g) * g)
    # TODO(synk): tile L with a 1-element halo when a single sequence > max_m.
    b_pad = -(-B // tb) * tb
    return b_pad, tb


# ----------------------------------------------------------------------------
# Wrapper
# ----------------------------------------------------------------------------
def generator_forward(x_ncl, params, *, max_m=4096, use_bf16_matmul=False):
    """x_ncl: (B, 1, L) float32 (PyTorch NCL).  Returns (B, 1, L)."""
    B, C, L = x_ncl.shape
    assert C == 1
    w1, b1, w2, b2, w3, b3, w4, b4 = params

    B_pad, TB = _plan_tiles(B, L, max_m)
    M = TB * L
    x_flat = x_ncl.reshape(1, B * L)                      # lane-dense single row
    if B_pad != B:
        x_flat = jnp.pad(x_flat, ((0, 0), (0, (B_pad - B) * L)))

    def full(a):
        return pl.BlockSpec(a.shape, lambda i: (0, 0))

    out = pl.pallas_call(
        functools.partial(_generator_kernel, L=L, bf16_mm=use_bf16_matmul),
        out_shape=jax.ShapeDtypeStruct((1, B_pad * L), jnp.float32),
        grid=(B_pad // TB,),
        in_specs=[
            pl.BlockSpec((1, M), lambda i: (0, i)),
            full(w1), full(b1), full(w2), full(b2),
            full(w3), full(b3), full(w4), full(b4),
        ],
        out_specs=pl.BlockSpec((1, M), lambda i: (0, i)),
        compiler_params=pltpu.CompilerParams(
            dimension_semantics=("parallel",),      # shard batch over v7x's 2 TCs
            vmem_limit_bytes=48 * 1024 * 1024,      # > v5e 16MiB default, < v7x 64MiB
        ),
    )(x_flat, w1, b1, w2, b2, w3, b3, w4, b4)
    return out[:, :B * L].reshape(B, 1, L)


# ----------------------------------------------------------------------------
# Parameters (PyTorch layouts) + conversion to the kernel's layouts
# ----------------------------------------------------------------------------
def init_pt_params(key):
    ks = jax.random.split(key, 8)
    s = 0.1
    w1 = jax.random.normal(ks[0], (64, 1, 3), jnp.float32) * s    # Conv1d  (Cout,Cin,K)
    b1 = jax.random.normal(ks[1], (64,), jnp.float32) * s
    w2 = jax.random.normal(ks[2], (128, 64, 3), jnp.float32) * s  # Conv1d  (Cout,Cin,K)
    b2 = jax.random.normal(ks[3], (128,), jnp.float32) * s
    w3 = jax.random.normal(ks[4], (128, 64, 3), jnp.float32) * s  # ConvT   (Cin,Cout,K)
    b3 = jax.random.normal(ks[5], (64,), jnp.float32) * s
    w4 = jax.random.normal(ks[6], (64, 1, 3), jnp.float32) * s    # ConvT   (Cin,Cout,K)
    b4 = jax.random.normal(ks[7], (1,), jnp.float32) * s
    return (w1, b1, w2, b2, w3, b3, w4, b4)


def convert_params(pt):
    w1, b1, w2, b2, w3, b3, w4, b4 = pt
    # Layer 1: (64,1,3) -> (64,3); per-tap VPU broadcast columns.
    w1k = w1[:, 0, :]
    # Layer 2: Conv1d (Cout=128, Cin=64, K=3) stacked output-side:
    #   row (k*128 + co) holds w2[co, :, k]  -> (3*128, 64).
    w2k = jnp.transpose(w2, (2, 0, 1)).reshape(3 * 128, 64)
    # Layer 3: ConvT(128->64, k=3, p=1, s=1) == conv with eff[co,ci,k] = w3[ci,co,2-k];
    #   stacked output-side -> (3*64, 128).
    w3k = jnp.transpose(w3[:, :, ::-1], (2, 1, 0)).reshape(3 * 64, 128)
    # Layer 4: ConvT(64->1): eff[0,ci,k] = w4[ci,0,2-k] -> (3, 64).
    w4k = jnp.transpose(w4[:, 0, ::-1], (1, 0))
    return (w1k, b1.reshape(-1, 1), w2k, b2.reshape(-1, 1),
            w3k, b3.reshape(-1, 1), w4k, b4.reshape(1, 1))


# ----------------------------------------------------------------------------
# Pure-JAX reference (independent of the kernel's weight rewrites)
# ----------------------------------------------------------------------------
def _conv1d_ref(x, w, b, padding=1):
    # x: (B, Cin, L), w: (Cout, Cin, K); PyTorch cross-correlation.
    K, L = w.shape[2], x.shape[2]
    xp = jnp.pad(x, ((0, 0), (0, 0), (padding, padding)))
    y = sum(jnp.einsum('bil,oi->bol', xp[:, :, k:k + L], w[:, :, k],
                       precision='highest') for k in range(K))
    return y + b[None, :, None]


def _conv_transpose1d_ref(x, w, b, padding=1):
    # x: (B, Cin, L), w: (Cin, Cout, K); scatter-add definition, stride 1.
    Bb, Cin, L = x.shape
    Cout, K = w.shape[1], w.shape[2]
    y_full = jnp.zeros((Bb, Cout, L + K - 1), jnp.float32)
    for k in range(K):
        contrib = jnp.einsum('bil,io->bol', x, w[:, :, k], precision='highest')
        y_full = y_full.at[:, :, k:k + L].add(contrib)
    return y_full[:, :, padding:padding + L] + b[None, :, None]


def ref_forward(x_ncl, pt_params):
    w1, b1, w2, b2, w3, b3, w4, b4 = pt_params
    h = jax.nn.relu(_conv1d_ref(x_ncl, w1, b1))
    h = jax.nn.relu(_conv1d_ref(h, w2, b2))
    h = jax.nn.relu(_conv_transpose1d_ref(h, w3, b3))
    return jnp.tanh(_conv_transpose1d_ref(h, w4, b4))


if __name__ == "__main__":
    key = jax.random.PRNGKey(0)
    k_x, k_p = jax.random.split(key)
    B, L = 2, 16
    x = jax.random.normal(k_x, (B, 1, L), jnp.float32)   # PyTorch NCL input
    pt_params = init_pt_params(k_p)
    params = convert_params(pt_params)

    y = generator_forward(x, params)
    jax.block_until_ready(y)

    y_ref = ref_forward(x, pt_params)
    assert y.shape == (B, 1, L)
    np.testing.assert_allclose(np.asarray(y), np.asarray(y_ref),
                               atol=5e-5, rtol=5e-5)
    print("KERNEL_OK")
</pallas_src>

<mosaic_0001>
module attributes {stable_mosaic.version = 11 : i64} {
  func.func @_generator_kernel(%arg0: i32, %arg1: memref<1x32xf32, #tpu.memory_space<vmem>>, %arg2: memref<64x3xf32, #tpu.memory_space<vmem>>, %arg3: memref<64x1xf32, #tpu.memory_space<vmem>>, %arg4: memref<384x64xf32, #tpu.memory_space<vmem>>, %arg5: memref<128x1xf32, #tpu.memory_space<vmem>>, %arg6: memref<192x128xf32, #tpu.memory_space<vmem>>, %arg7: memref<64x1xf32, #tpu.memory_space<vmem>>, %arg8: memref<3x64xf32, #tpu.memory_space<vmem>>, %arg9: memref<1x1xf32, #tpu.memory_space<vmem>>, %arg10: memref<1x32xf32, #tpu.memory_space<vmem>>) attributes {dimension_semantics = [#tpu.dimension_semantics<parallel>], iteration_bounds = array<i64: 1>, scalar_prefetch = 0 : i64, scratch_operands = 0 : i64, tpu.core_type = #tpu.core_type<tc>, window_params = [{transform_indices = @transform_0, window_bounds = array<i64: 1, 32>}, {pipeline_mode = #tpu.pipeline_mode<synchronous>, transform_indices = @transform_1, window_bounds = array<i64: 64, 3>}, {pipeline_mode = #tpu.pipeline_mode<synchronous>, transform_indices = @transform_2, window_bounds = array<i64: 64, 1>}, {pipeline_mode = #tpu.pipeline_mode<synchronous>, transform_indices = @transform_3, window_bounds = array<i64: 384, 64>}, {pipeline_mode = #tpu.pipeline_mode<synchronous>, transform_indices = @transform_4, window_bounds = array<i64: 128, 1>}, {pipeline_mode = #tpu.pipeline_mode<synchronous>, transform_indices = @transform_5, window_bounds = array<i64: 192, 128>}, {pipeline_mode = #tpu.pipeline_mode<synchronous>, transform_indices = @transform_6, window_bounds = array<i64: 64, 1>}, {pipeline_mode = #tpu.pipeline_mode<synchronous>, transform_indices = @transform_7, window_bounds = array<i64: 3, 64>}, {pipeline_mode = #tpu.pipeline_mode<synchronous>, transform_indices = @transform_8, window_bounds = array<i64: 1, 1>}, {transform_indices = @transform_9, window_bounds = array<i64: 1, 32>}]} {
    %0 = tpu.iota {dimensions = array<i32: 1>} : vector<1x32xi32>
    %c16_i32 = arith.constant 16 : i32
    %c0_i32 = arith.constant 0 : i32
    %1 = arith.cmpi eq, %c16_i32, %c0_i32 : i32
    %c1_i32 = arith.constant 1 : i32
    %2 = arith.select %1, %c1_i32, %c16_i32 : i32
    %3 = vector.broadcast %2 : i32 to vector<1x32xi32>
    %4 = arith.remsi %0, %3 : vector<1x32xi32>
    %c0_i32_0 = arith.constant 0 : i32
    %5 = vector.broadcast %c0_i32_0 : i32 to vector<1x32xi32>
    %6 = arith.cmpi ne, %4, %5 : vector<1x32xi32>
    %c0_i32_1 = arith.constant 0 : i32
    %7 = vector.broadcast %c0_i32_1 : i32 to vector<1x32xi32>
    %8 = arith.cmpi slt, %4, %7 : vector<1x32xi32>
    %c0_i32_2 = arith.constant 0 : i32
    %9 = arith.cmpi slt, %2, %c0_i32_2 : i32
    %10 = vector.broadcast %9 : i1 to vector<1x32xi1>
    %11 = vector.broadcast %10 : vector<1x32xi1> to vector<1x32xi1>
    %12 = arith.xori %8, %11 : vector<1x32xi1>
    %13 = arith.andi %12, %6 : vector<1x32xi1>
    %14 = vector.broadcast %2 : i32 to vector<1x32xi32>
    %15 = arith.addi %4, %14 : vector<1x32xi32>
    %16 = arith.select %13, %15, %4 : vector<1x32xi1>, vector<1x32xi32>
    %c0_i32_3 = arith.constant 0 : i32
    %17 = vector.broadcast %c0_i32_3 : i32 to vector<1x32xi32>
    %18 = arith.cmpi ne, %16, %17 : vector<1x32xi32>
    %19 = arith.extui %18 : vector<1x32xi1> to vector<1x32xi32>
    %20 = arith.sitofp %19 : vector<1x32xi32> to vector<1x32xf32>
    %c15_i32 = arith.constant 15 : i32
    %21 = vector.broadcast %c15_i32 : i32 to vector<1x32xi32>
    %22 = arith.cmpi ne, %16, %21 : vector<1x32xi32>
    %23 = arith.extui %22 : vector<1x32xi1> to vector<1x32xi32>
    %24 = arith.sitofp %23 : vector<1x32xi32> to vector<1x32xf32>
    %c0 = arith.constant 0 : index
    %c0_4 = arith.constant 0 : index
    %25 = vector.load %arg1[%c0, %c0_4] : memref<1x32xf32, #tpu.memory_space<vmem>>, vector<1x32xf32>
    %c1_i32_5 = arith.constant 1 : i32
    %26 = tpu.dynamic_rotate %25 by %c1_i32_5 dim 1 : vector<1x32xf32>, i32 -> vector<1x32xf32>
    %27 = arith.mulf %26, %20 : vector<1x32xf32>
    %c31_i32 = arith.constant 31 : i32
    %28 = tpu.dynamic_rotate %25 by %c31_i32 dim 1 : vector<1x32xf32>, i32 -> vector<1x32xf32>
    %29 = arith.mulf %28, %24 : vector<1x32xf32>
    %c0_6 = arith.constant 0 : index
    %c0_7 = arith.constant 0 : index
    %30 = vector.load %arg2[%c0_6, %c0_7] : memref<64x3xf32, #tpu.memory_space<vmem>>, vector<64x3xf32>
    %31 = vector.extract_strided_slice %30 {offsets = [0, 0], sizes = [64, 1], strides = [1, 1]} : vector<64x3xf32> to vector<64x1xf32>
    %32 = vector.broadcast %31 : vector<64x1xf32> to vector<64x32xf32>
    %33 = vector.broadcast %27 : vector<1x32xf32> to vector<64x32xf32>
    %34 = arith.mulf %32, %33 : vector<64x32xf32>
    %35 = vector.extract_strided_slice %30 {offsets = [0, 1], sizes = [64, 1], strides = [1, 1]} : vector<64x3xf32> to vector<64x1xf32>
    %36 = vector.broadcast %35 : vector<64x1xf32> to vector<64x32xf32>
    %37 = vector.broadcast %25 : vector<1x32xf32> to vector<64x32xf32>
    %38 = arith.mulf %36, %37 : vector<64x32xf32>
    %39 = arith.addf %34, %38 : vector<64x32xf32>
    %40 = vector.extract_strided_slice %30 {offsets = [0, 2], sizes = [64, 1], strides = [1, 1]} : vector<64x3xf32> to vector<64x1xf32>
    %41 = vector.broadcast %40 : vector<64x1xf32> to vector<64x32xf32>
    %42 = vector.broadcast %29 : vector<1x32xf32> to vector<64x32xf32>
    %43 = arith.mulf %41, %42 : vector<64x32xf32>
    %44 = arith.addf %39, %43 : vector<64x32xf32>
    %c0_8 = arith.constant 0 : index
    %c0_9 = arith.constant 0 : index
    %45 = vector.load %arg3[%c0_8, %c0_9] : memref<64x1xf32, #tpu.memory_space<vmem>>, vector<64x1xf32>
    %46 = vector.broadcast %45 : vector<64x1xf32> to vector<64x32xf32>
    %47 = arith.addf %44, %46 : vector<64x32xf32>
    %cst = arith.constant 0.000000e+00 : f32
    %48 = vector.broadcast %cst : f32 to vector<64x32xf32>
    %49 = arith.maximumf %47, %48 : vector<64x32xf32>
    %c0_10 = arith.constant 0 : index
    %c0_11 = arith.constant 0 : index
    %50 = vector.load %arg4[%c0_10, %c0_11] : memref<384x64xf32, #tpu.memory_space<vmem>>, vector<384x64xf32>
    %cst_12 = arith.constant dense<0.000000e+00> : vector<384x32xf32>
    %51 = tpu.matmul %50, %49, %cst_12 {dimension_numbers = #tpu.dot_dimension_numbers<[1], [0], [0], [1], [0, 0, 1, 1], [], []>} : vector<384x64xf32>, vector<64x32xf32>, vector<384x32xf32> -> vector<384x32xf32>
    %c0_13 = arith.constant 0 : index
    %c0_14 = arith.constant 0 : index
    %52 = vector.load %arg5[%c0_13, %c0_14] : memref<128x1xf32, #tpu.memory_space<vmem>>, vector<128x1xf32>
    %53 = vector.extract_strided_slice %51 {offsets = [0, 0], sizes = [128, 32], strides = [1, 1]} : vector<384x32xf32> to vector<128x32xf32>
    %54 = vector.extract_strided_slice %51 {offsets = [128, 0], sizes = [128, 32], strides = [1, 1]} : vector<384x32xf32> to vector<128x32xf32>
    %55 = vector.extract_strided_slice %51 {offsets = [256, 0], sizes = [128, 32], strides = [1, 1]} : vector<384x32xf32> to vector<128x32xf32>
    %c1_i32_15 = arith.constant 1 : i32
    %56 = tpu.dynamic_rotate %53 by %c1_i32_15 dim 1 : vector<128x32xf32>, i32 -> vector<128x32xf32>
    %57 = vector.broadcast %20 : vector<1x32xf32> to vector<128x32xf32>
    %58 = arith.mulf %57, %56 : vector<128x32xf32>
    %59 = arith.addf %54, %58 : vector<128x32xf32>
    %c31_i32_16 = arith.constant 31 : i32
    %60 = tpu.dynamic_rotate %55 by %c31_i32_16 dim 1 : vector<128x32xf32>, i32 -> vector<128x32xf32>
    %61 = vector.broadcast %24 : vector<1x32xf32> to vector<128x32xf32>
    %62 = arith.mulf %61, %60 : vector<128x32xf32>
    %63 = arith.addf %59, %62 : vector<128x32xf32>
    %64 = vector.broadcast %52 : vector<128x1xf32> to vector<128x32xf32>
    %65 = arith.addf %63, %64 : vector<128x32xf32>
    %cst_17 = arith.constant 0.000000e+00 : f32
    %66 = vector.broadcast %cst_17 : f32 to vector<128x32xf32>
    %67 = arith.maximumf %65, %66 : vector<128x32xf32>
    %c0_18 = arith.constant 0 : index
    %c0_19 = arith.constant 0 : index
    %68 = vector.load %arg6[%c0_18, %c0_19] : memref<192x128xf32, #tpu.memory_space<vmem>>, vector<192x128xf32>
    %cst_20 = arith.constant dense<0.000000e+00> : vector<192x32xf32>
    %69 = tpu.matmul %68, %67, %cst_20 {dimension_numbers = #tpu.dot_dimension_numbers<[1], [0], [0], [1], [0, 0, 1, 1], [], []>} : vector<192x128xf32>, vector<128x32xf32>, vector<192x32xf32> -> vector<192x32xf32>
    %c0_21 = arith.constant 0 : index
    %c0_22 = arith.constant 0 : index
    %70 = vector.load %arg7[%c0_21, %c0_22] : memref<64x1xf32, #tpu.memory_space<vmem>>, vector<64x1xf32>
    %71 = vector.extract_strided_slice %69 {offsets = [0, 0], sizes = [64, 32], strides = [1, 1]} : vector<192x32xf32> to vector<64x32xf32>
    %72 = vector.extract_strided_slice %69 {offsets = [64, 0], sizes = [64, 32], strides = [1, 1]} : vector<192x32xf32> to vector<64x32xf32>
    %73 = vector.extract_strided_slice %69 {offsets = [128, 0], sizes = [64, 32], strides = [1, 1]} : vector<192x32xf32> to vector<64x32xf32>
    %c1_i32_23 = arith.constant 1 : i32
    %74 = tpu.dynamic_rotate %71 by %c1_i32_23 dim 1 : vector<64x32xf32>, i32 -> vector<64x32xf32>
    %75 = vector.broadcast %20 : vector<1x32xf32> to vector<64x32xf32>
    %76 = arith.mulf %75, %74 : vector<64x32xf32>
    %77 = arith.addf %72, %76 : vector<64x32xf32>
    %c31_i32_24 = arith.constant 31 : i32
    %78 = tpu.dynamic_rotate %73 by %c31_i32_24 dim 1 : vector<64x32xf32>, i32 -> vector<64x32xf32>
    %79 = vector.broadcast %24 : vector<1x32xf32> to vector<64x32xf32>
    %80 = arith.mulf %79, %78 : vector<64x32xf32>
    %81 = arith.addf %77, %80 : vector<64x32xf32>
    %82 = vector.broadcast %70 : vector<64x1xf32> to vector<64x32xf32>
    %83 = arith.addf %81, %82 : vector<64x32xf32>
    %cst_25 = arith.constant 0.000000e+00 : f32
    %84 = vector.broadcast %cst_25 : f32 to vector<64x32xf32>
    %85 = arith.maximumf %83, %84 : vector<64x32xf32>
    %c0_26 = arith.constant 0 : index
    %c0_27 = arith.constant 0 : index
    %86 = vector.load %arg8[%c0_26, %c0_27] : memref<3x64xf32, #tpu.memory_space<vmem>>, vector<3x64xf32>
    %cst_28 = arith.constant dense<0.000000e+00> : vector<3x32xf32>
    %87 = tpu.matmul %86, %85, %cst_28 {dimension_numbers = #tpu.dot_dimension_numbers<[1], [0], [0], [1], [0, 0, 1, 1], [], []>} : vector<3x64xf32>, vector<64x32xf32>, vector<3x32xf32> -> vector<3x32xf32>
    %c0_29 = arith.constant 0 : index
    %c0_30 = arith.constant 0 : index
    %88 = vector.load %arg9[%c0_29, %c0_30] : memref<1x1xf32, #tpu.memory_space<vmem>>, vector<1x1xf32>
    %89 = vector.extract_strided_slice %87 {offsets = [0, 0], sizes = [1, 32], strides = [1, 1]} : vector<3x32xf32> to vector<1x32xf32>
    %90 = vector.extract_strided_slice %87 {offsets = [1, 0], sizes = [1, 32], strides = [1, 1]} : vector<3x32xf32> to vector<1x32xf32>
    %91 = vector.extract_strided_slice %87 {offsets = [2, 0], sizes = [1, 32], strides = [1, 1]} : vector<3x32xf32> to vector<1x32xf32>
    %c1_i32_31 = arith.constant 1 : i32
    %92 = tpu.dynamic_rotate %89 by %c1_i32_31 dim 1 : vector<1x32xf32>, i32 -> vector<1x32xf32>
    %93 = arith.mulf %20, %92 : vector<1x32xf32>
    %94 = arith.addf %90, %93 : vector<1x32xf32>
    %c31_i32_32 = arith.constant 31 : i32
    %95 = tpu.dynamic_rotate %91 by %c31_i32_32 dim 1 : vector<1x32xf32>, i32 -> vector<1x32xf32>
    %96 = arith.mulf %24, %95 : vector<1x32xf32>
    %97 = arith.addf %94, %96 : vector<1x32xf32>
    %98 = vector.broadcast %88 : vector<1x1xf32> to vector<1x32xf32>
    %99 = arith.addf %97, %98 : vector<1x32xf32>
    %100 = math.tanh %99 : vector<1x32xf32>
    %c0_33 = arith.constant 0 : index
    %c0_34 = arith.constant 0 : index
    %101 = vector.load %arg10[%c0_33, %c0_34] : memref<1x32xf32, #tpu.memory_space<vmem>>, vector<1x32xf32>
    tpu.vector_store %arg10[%c0_33, %c0_34], %100 {strides = array<i32>} : memref<1x32xf32, #tpu.memory_space<vmem>>, vector<1x32xf32>,
    return
  }
  func.func @transform_0(%arg0: i32) -> (i32, i32) {
    %c0_i32 = arith.constant 0 : i32
    %c0_i32_0 = arith.constant 0 : i32
    return %c0_i32, %arg0 : i32, i32
  }
  func.func @transform_1(%arg0: i32) -> (i32, i32) {
    %c0_i32 = arith.constant 0 : i32
    %c0_i32_0 = arith.constant 0 : i32
    %c0_i32_1 = arith.constant 0 : i32
    return %c0_i32, %c0_i32_0 : i32, i32
  }
  func.func @transform_2(%arg0: i32) -> (i32, i32) {
    %c0_i32 = arith.constant 0 : i32
    %c0_i32_0 = arith.constant 0 : i32
    %c0_i32_1 = arith.constant 0 : i32
    return %c0_i32, %c0_i32_0 : i32, i32
  }
  func.func @transform_3(%arg0: i32) -> (i32, i32) {
    %c0_i32 = arith.constant 0 : i32
    %c0_i32_0 = arith.constant 0 : i32
    %c0_i32_1 = arith.constant 0 : i32
    return %c0_i32, %c0_i32_0 : i32, i32
  }
  func.func @transform_4(%arg0: i32) -> (i32, i32) {
    %c0_i32 = arith.constant 0 : i32
    %c0_i32_0 = arith.constant 0 : i32
    %c0_i32_1 = arith.constant 0 : i32
    return %c0_i32, %c0_i32_0 : i32, i32
  }
  func.func @transform_5(%arg0: i32) -> (i32, i32) {
    %c0_i32 = arith.constant 0 : i32
    %c0_i32_0 = arith.constant 0 : i32
    %c0_i32_1 = arith.constant 0 : i32
    return %c0_i32, %c0_i32_0 : i32, i32
  }
  func.func @transform_6(%arg0: i32) -> (i32, i32) {
    %c0_i32 = arith.constant 0 : i32
    %c0_i32_0 = arith.constant 0 : i32
    %c0_i32_1 = arith.constant 0 : i32
    return %c0_i32, %c0_i32_0 : i32, i32
  }
  func.func @transform_7(%arg0: i32) -> (i32, i32) {
    %c0_i32 = arith.constant 0 : i32
    %c0_i32_0 = arith.constant 0 : i32
    %c0_i32_1 = arith.constant 0 : i32
    return %c0_i32, %c0_i32_0 : i32, i32
  }
  func.func @transform_8(%arg0: i32) -> (i32, i32) {
    %c0_i32 = arith.constant 0 : i32
    %c0_i32_0 = arith.constant 0 : i32
    %c0_i32_1 = arith.constant 0 : i32
    return %c0_i32, %c0_i32_0 : i32, i32
  }
  func.func @transform_9(%arg0: i32) -> (i32, i32) {
    %c0_i32 = arith.constant 0 : i32
    %c0_i32_0 = arith.constant 0 : i32
    return %c0_i32, %arg0 : i32, i32
  }
}

</mosaic_0001>

<bundles_post_ra>
// kernel: tpu_custom_call.1
= control target key start
LH: loop header
LB: loop body
LE: loop exit
PB: predicated region body
PF: predicated region fallthrough
CT: control target
= control target key end

     0   :  { %s3567_s0 = inlined_call_operand.vmem [shape: f32[1,32], index: 0, kind: input, shape index: {}]   ;;  %s3568_s1 = inlined_call_operand.vmem [shape: f32[64,3], index: 1, kind: input, shape index: {}]   ;;  %s3569_s2 = inlined_call_operand.vmem [shape: f32[64,1], index: 2, kind: input, shape index: {}]   ;;  %s3570_s3 = inlined_call_operand.vmem [shape: f32[384,64], index: 3, kind: input, shape index: {}]   ;;  %s3571_s4 = inlined_call_operand.vmem [shape: f32[128,1], index: 4, kind: input, shape index: {}]   ;;  %s3572_s5 = inlined_call_operand.vmem [shape: f32[192,128], index: 5, kind: input, shape index: {}]   ;;  %s3573_s6 = inlined_call_operand.vmem [shape: f32[64,1], index: 6, kind: input, shape index: {}]   ;;  %s3574_s7 = inlined_call_operand.vmem [shape: f32[3,64], index: 7, kind: input, shape index: {}]   ;;  %s3575_s8 = inlined_call_operand.<no memory space> [shape: f32[1,1], index: 8, kind: input, shape index: {}]   ;;  %s3576_s9 = inlined_call_operand.hbm [shape: f32[1,32], index: 9, kind: output, shape index: {}]  }
   0x1   :  { %v14_v0 = vstv %s3575_s8 }
   0x2   :  { %15 = vst [vmem:[#allocation2] sm:$0x1] %v14_v0 }
   0x3   :  { %v2455_v1 = vld [vmem:[%s3567_s0] sm:$0x1]  ;;  %v35_v2 = vlaneseq  ;;  %v2460_v3 = vld [vmem:[%s3568_s1 + $0x30] sm:$0xff]  ;;  %v2387_v4 = vmov 1   ;;  %s2388_s15 = smov 32   ;;  %v80_v6 = vld [vmem:[%s3568_s1 + $0x38] sm:$0xff] }
   0x4   :  { %2353 = vset.pattern.permute.xlu1 %v2387_v4  ;;  %57 = vrot.lane.b32.xlu0 %v2455_v1, %s2388_s15 }
   0x5   :  { %v36_v5 = vand.u32 127, %v35_v2  ;;  %158 = vperm.xlu1 %2353, %v2460_v3   ;;  %2352 = vset.pattern.permute.xlu0 %v2387_v4 }
   0x7   :  { %v41_v7 = vand.u32 15, %v36_v5 }
   0x8   :  { %16 = vsyncpa [#allocation4], 0  ;;  %162 = vperm.xlu0 %2352, %v80_v6   ;;  %v2389_v8 = vmov 2   ;;  %v3577_v9 = vmov 0.0   ;;  %s2391_s0 = smov 1   ;;  %v78_v11 = vld [vmem:[%s3568_s1 + $0x28] sm:$0xff] }
   0x9   :  { %vm52_vm0 = vcmp.ne.s32.totalorder %v41_v7, 15  ;;  %2354 = vset.pattern.permute.xlu1 %v2389_v8  ;;  %v77_v12 = vld [vmem:[%s3568_s1 + $0x20] sm:$0xff]  ;;  %v76_v13 = vld [vmem:[%s3568_s1 + $0x18] sm:$0xff]  ;;  %v75_v15 = vld [vmem:[%s3568_s1 + $0x10] sm:$0xff]  ;;  %v2392_v16 = vmov 0   ;;  %vm56_vm1 = vcmask 1047808  }
   0xa   :  { %v2469_v10 = vsel %vm52_vm0, 1.0, %v3577_v9  ;;  %248 = vperm.xlu1 %2354, %v80_v6   ;;  %v73_v14 = vld [vmem:[%s3568_s1] sm:$0xff]  ;;  %v74_v17 = vld [vmem:[%s3568_s1 + $0x8] sm:$0xff]  ;;  %v310_v18 = vld [vmem:[%s3569_s2 + $0x38] sm:$0xff]  ;;  %v122_v21 = vshrl.u32 %v35_v2, 7  ;;  %vm49_vm2 = vcmp.ne.s32.totalorder %v41_v7, 0 }
   0xb   :  { %v305_v19 = vld [vmem:[%s3569_s2 + $0x10] sm:$0xff]  ;;  %v303_v20 = vld [vmem:[%s3569_s2] sm:$0xff]  ;;  %s2393_s13 = smov 31   ;;  %v2509_v29 = vsel %vm49_vm2, 1.0, %v3577_v9  ;;  %v308_v42 = vld [vmem:[%s3569_s2 + $0x28] sm:$0xff]  ;;  %s2395_s23 = smov 97  }
   0xc   :  { %69 = vrot.lane.b32.xlu0 %v2469_v10, %s2391_s0  ;;  %v2503_v24 = vsub.s32 0, %v122_v21  ;;  %v309_v38 = vld [vmem:[%s3569_s2 + $0x30] sm:$0xff]  ;;  %v307_v44 = vld [vmem:[%s3569_s2 + $0x20] sm:$0xff]  ;;  %v306_v46 = vld [vmem:[%s3569_s2 + $0x18] sm:$0xff]  ;;  %vm447_vm3 = vcmask 523264   ;;  %s2396_s26 = smov 127  }
   0xd   :  { %2356 = vset.pattern.permute.xlu0 %v2389_v8  ;;  %v304_v49 = vld [vmem:[%s3569_s2 + $0x8] sm:$0xff]  ;;  %s2394_s2 = smov 30   ;;  %vm2397_vm4 = vmmov 0   ;;  %vm1993_vm5 = vcmask 254977  }
   0xe   :  { %2355 = vset.pattern.permute.xlu1 %v2387_v4  ;;  %3580 = vst [vmem:[#allocation6_spill] sm:$0xff] %v2503_v24  ;;  %v169_v25 = vrot.slane %v2455_v1, %v2503_v24 }
   0xf   :  { %154 = vperm.xlu1 %2355, %v78_v11  }
  0x10   :  { %244 = vperm.xlu0 %2356, %v2460_v3  }
  0x13   :  { %150 = vperm.xlu1 %2355, %v77_v12  }
  0x14   :  { %232 = vperm.xlu0 %2356, %v76_v13  }
  0x17   :  { %2357 = vset.pattern.permute.xlu1 %v2389_v8 }
  0x18   :  { %240 = vperm.xlu1 %2357, %v78_v11   ;;  %2359 = vset.pattern.permute.xlu0 %v2387_v4 }
  0x19   :  { %146 = vperm.xlu0 %2359, %v76_v13  }
  0x1c   :  { %236 = vperm.xlu1 %2357, %v77_v12  }
  0x1d   :  { %134 = vperm.xlu0 %2359, %v73_v14  }
  0x20   :  { %2358 = vset.pattern.permute.xlu1 %v2387_v4 }
  0x21   :  { %142 = vperm.xlu1 %2358, %v75_v15   ;;  %2361 = vset.pattern.permute.xlu0 %v2392_v16 }
  0x22   :  { %118 = vperm.xlu0 %2361, %v80_v6  }
  0x25   :  { %138 = vperm.xlu1 %2358, %v74_v17  }
  0x26   :  { %108 = vperm.xlu0 %2361, %v78_v11  }
  0x29   :  { %2360 = vset.pattern.permute.xlu1 %v2389_v8 }
  0x2a   :  { %348 = vperm.xlu0 %2361, %v310_v18  }
  0x2e   :  { %98 = vperm.xlu0 %2361, %v76_v13  }
  0x32   :  { %93 = vperm.xlu0 %2361, %v75_v15  }
  0x36   :  { %88 = vperm.xlu0 %2361, %v74_v17  }
  0x3a   :  { %83 = vperm.xlu0 %2361, %v73_v14  }
  0x3e   :  { %323 = vperm.xlu0 %2361, %v305_v19  }
  0x42   :  { %313 = vperm.xlu0 %2361, %v303_v20  }
  0x76   :  { %v58_v22 = vpop.permute.xlu0 %57 }
  0x77   :  { %v59_v23 = vsel %vm56_vm1, %v58_v22, %v2455_v1 }
  0x78   :  { %60 = vrot.lane.b32.xlu1 %v59_v23, %s2388_s15 }
  0x7c   :  { %228 = vperm.xlu1 %2360, %v75_v15  }
  0x80   :  { %224 = vperm.xlu1 %2360, %v74_v17   ;;  %v159_v26 = vpop.permute.xlu1 %158 }
  0x81   :  { %v177_v27 = vmul.f32 %v169_v25, %v159_v26 }
  0x83   :  { %v163_v28 = vpop.permute.xlu0 %162  ;;  %199 = vrot.lane.b32.xlu0 %v177_v27, %s2393_s13 }
  0x84   :  { %220 = vperm.xlu1 %2360, %v73_v14   ;;  %v178_v50 = vmul.f32 %v169_v25, %v163_v28 }
  0x85   :  { %v249_v30 = vpop.permute.xlu1 %248 }
  0x87   :  { %v70_v31 = vpop.permute.xlu0 %69 }
  0x88   :  { %64 = vrot.lane.b32.xlu1 %v2509_v29, %s2393_s13 }
  0x89   :  { %2362 = vset.pattern.permute.xlu1 %v2392_v16 }
  0x8a   :  { %v155_v32 = vpop.permute.xlu1 %154 }
  0x8b   :  { %v176_v33 = vmul.f32 %v169_v25, %v155_v32  ;;  %v245_v34 = vpop.permute.xlu0 %244 }
  0x8c   :  { %113 = vperm.xlu1 %2362, %v2460_v3  }
  0x8d   :  { %197 = vrot.lane.b32.xlu0 %v176_v33, %s2393_s13 }
  0x8e   :  { %v151_v35 = vpop.permute.xlu1 %150 }
  0x8f   :  { %v175_v36 = vmul.f32 %v169_v25, %v151_v35  ;;  %v233_v37 = vpop.permute.xlu0 %232 }
  0x90   :  { %103 = vperm.xlu1 %2362, %v77_v12  }
  0x91   :  { %195 = vrot.lane.b32.xlu0 %v175_v36, %s2393_s13 }
  0x93   :  { %v241_v39 = vpop.permute.xlu1 %240 }
  0x94   :  { %v147_v40 = vpop.permute.xlu0 %146  ;;  %343 = vperm.xlu1 %2362, %v309_v38  }
  0x95   :  { %v174_v41 = vmul.f32 %v169_v25, %v147_v40 }
  0x97   :  { %193 = vrot.lane.b32.xlu0 %v174_v41, %s2393_s13  ;;  %v237_v43 = vpop.permute.xlu1 %236 }
  0x98   :  { %338 = vperm.xlu1 %2362, %v308_v42   ;;  %v135_v52 = vpop.permute.xlu0 %134 }
  0x99   :  { %v171_v53 = vmul.f32 %v169_v25, %v135_v52 }
  0x9c   :  { %v143_v45 = vpop.permute.xlu1 %142  ;;  %333 = vperm.xlu1 %2362, %v307_v44  }
  0x9d   :  { %v173_v51 = vmul.f32 %v169_v25, %v143_v45  ;;  %v119_v5 = vpop.permute.xlu0 %118 }
  0xa0   :  { %v139_v47 = vpop.permute.xlu1 %138  ;;  %328 = vperm.xlu1 %2362, %v306_v46  }
  0xa1   :  { %v172_v48 = vmul.f32 %v169_v25, %v139_v47  ;;  %v109_v6 = vpop.permute.xlu0 %108 }
  0xa3   :  { %189 = vrot.lane.b32.xlu0 %v172_v48, %s2393_s13 }
  0xa4   :  { %318 = vperm.xlu1 %2362, %v304_v49  }
  0xa5   :  { %v349_v8 = vpop.permute.xlu0 %348 }
  0xa8   :  { %201 = vrot.lane.b32.xlu1 %v178_v50, %s2393_s13 }
  0xa9   :  { %v99_v12 = vpop.permute.xlu0 %98 }
  0xac   :  { %191 = vrot.lane.b32.xlu1 %v173_v51, %s2393_s13 }
  0xad   :  { %v94_v14 = vpop.permute.xlu0 %93 }
  0xb0   :  { %187 = vrot.lane.b32.xlu1 %v171_v53, %s2393_s13 }
  0xb1   :  { %v89_v16 = vpop.permute.xlu0 %88 }
  0xb5   :  { %v84_v18 = vpop.permute.xlu0 %83 }
  0xb9   :  { %v324_v20 = vpop.permute.xlu0 %323 }
  0xbd   :  { %v2539_v22 = vpop.permute.xlu0 %313 }
  0xea   :  { %v61_v54 = vpop.permute.xlu1 %60 }
  0xeb   :  { %v62_v55 = vsel %vm56_vm1, %v61_v54, %v2455_v1 }
  0xec   :  { %v72_v56 = vmul.f32 %v70_v31, %v62_v55 }
  0xee   :  { %v254_v57 = vrot.slane %v72_v56, %v2503_v24 }
  0xf0   :  { %v258_v58 = vmul.f32 %v254_v57, %v233_v37  ;;  %v262_v59 = vmul.f32 %v254_v57, %v249_v30  ;;  %v261_v60 = vmul.f32 %v254_v57, %v245_v34  ;;  %v260_v62 = vmul.f32 %v254_v57, %v241_v39 }
  0xf1   :  { %v259_v2 = vmul.f32 %v254_v57, %v237_v43 }
  0xf2   :  { %277 = vrot.lane.b32.xlu0 %v258_v58, %s2394_s2  ;;  %285 = vrot.lane.b32.xlu1 %v262_v59, %s2394_s2 }
  0xf5   :  { %v200_v25 = vpop.permute.xlu0 %199 }
  0xf6   :  { %283 = vrot.lane.b32.xlu1 %v261_v60, %s2394_s2 }
  0xf7   :  { %v229_v61 = vpop.permute.xlu1 %228 }
  0xf8   :  { %v257_v3 = vmul.f32 %v254_v57, %v229_v61 }
  0xfa   :  { %281 = vrot.lane.b32.xlu1 %v260_v62, %s2394_s2 }
  0xfb   :  { %v225_v63 = vpop.permute.xlu1 %224 }
  0xfc   :  { %v256_v0 = vmul.f32 %v254_v57, %v225_v63 }
  0xfe   :  { %273 = vrot.lane.b32.xlu0 %v256_v0, %s2394_s2  ;;  %279 = vrot.lane.b32.xlu1 %v259_v2, %s2394_s2 }
  0xff   :  { %v221_v1 = vpop.permute.xlu1 %220  ;;  %v198_v27 = vpop.permute.xlu0 %197 }
 0x100   :  { %v255_v4 = vmul.f32 %v254_v57, %v221_v1 }
 0x102   :  { %275 = vrot.lane.b32.xlu1 %v257_v3, %s2394_s2 }
 0x103   :  { %v65_v7 = vpop.permute.xlu1 %64  ;;  %v196_v31 = vpop.permute.xlu0 %195 }
 0x104   :  { %v67_v28 = vmul.f32 %v65_v7, %v62_v55 }
 0x106   :  { %271 = vrot.lane.b32.xlu1 %v255_v4, %s2394_s2  ;;  %v124_v32 = vrot.slane %v67_v28, %v2503_v24 }
 0x107   :  { %v114_v11 = vpop.permute.xlu1 %113 }
 0x108   :  { %v132_v34 = vmul.f32 %v124_v32, %v119_v5  ;;  %v131_v36 = vmul.f32 %v124_v32, %v114_v11  ;;  %v128_v41 = vmul.f32 %v124_v32, %v99_v12  ;;  %v130_v44 = vmul.f32 %v124_v32, %v109_v6  ;;  %v367_v6 = vld [vmem:[%s3570_s3] sm:$0xff] }
 0x109   :  { %v194_v35 = vpop.permute.xlu0 %193  ;;  %v126_v54 = vmul.f32 %v124_v32, %v89_v16  ;;  %v127_v61 = vmul.f32 %v124_v32, %v94_v14  ;;  %v125_v7 = vmul.f32 %v124_v32, %v84_v18  ;;  %2181 = vmatprep.mubr.msk.f32.mxu0 %vm447_vm3, %v367_v6  ;;  %v911_v18 = vld [vmem:[%s3571_s4 + $0x70] sm:$0xff] }
 0x10a   :  { %v217_v43 = vadd.f32 %v200_v25, %v131_v36  ;;  %v214_v49 = vadd.f32 %v194_v35, %v128_v41  ;;  %v216_v52 = vadd.f32 %v198_v27, %v130_v44  ;;  %v910_v27 = vld [vmem:[%s3571_s4 + $0x68] sm:$0xff]  ;;  %v375_v44 = vld [vmem:[%s3570_s3 + $0x40] sm:$0xff]  ;;  %v401_v6 = vld [vmem:[%s3570_s3 + $0x110] sm:$0xff] }
 0x10b   :  { %v104_v13 = vpop.permute.xlu1 %103  ;;  %v372_v41 = vld [vmem:[%s3570_s3 + $0x28] sm:$0xff] }
 0x10c   :  { %v129_v50 = vmul.f32 %v124_v32, %v104_v13 }
 0x10e   :  { %v215_v60 = vadd.f32 %v196_v31, %v129_v50  ;;  %v381_v50 = vld [vmem:[%s3570_s3 + $0x70] sm:$0xff] }
 0x10f   :  { %v344_v15 = vpop.permute.xlu1 %343 }
 0x113   :  { %v339_v17 = vpop.permute.xlu1 %338 }
 0x115   :  { %v190_v40 = vpop.permute.xlu0 %189 }
 0x116   :  { %v212_v58 = vadd.f32 %v190_v40, %v126_v54  ;;  %v371_v40 = vld [vmem:[%s3570_s3 + $0x20] sm:$0xff]  ;;  %v385_v54 = vld [vmem:[%s3570_s3 + $0x90] sm:$0xff] }
 0x117   :  { %v334_v19 = vpop.permute.xlu1 %333 }
 0x11b   :  { %v329_v21 = vpop.permute.xlu1 %328 }
 0x11f   :  { %v319_v23 = vpop.permute.xlu1 %318 }
 0x123   :  { %v202_v26 = vpop.permute.xlu1 %201 }
 0x124   :  { %v218_v37 = vadd.f32 %v202_v26, %v132_v34 }
 0x127   :  { %v192_v30 = vpop.permute.xlu1 %191 }
 0x128   :  { %v213_v4 = vadd.f32 %v192_v30, %v127_v61  ;;  %v392_v61 = vld [vmem:[%s3570_s3 + $0xc8] sm:$0xff] }
 0x12b   :  { %v188_v33 = vpop.permute.xlu1 %187 }
 0x164   :  { %v286_v38 = vpop.permute.xlu1 %285  ;;  %v278_v48 = vpop.permute.xlu0 %277 }
 0x165   :  { %v302_v39 = vadd.f32 %v286_v38, %v218_v37  ;;  %v298_v55 = vadd.f32 %v278_v48, %v214_v49  ;;  %v368_v37 = vld [vmem:[%s3570_s3 + $0x8] sm:$0xff]  ;;  %v369_v38 = vld [vmem:[%s3570_s3 + $0x10] sm:$0xff]  ;;  %v379_v48 = vld [vmem:[%s3570_s3 + $0x60] sm:$0xff] }
 0x166   :  { %v380_v49 = vld [vmem:[%s3570_s3 + $0x68] sm:$0xff] }
 0x167   :  { %v358_v42 = vadd.f32 %v349_v8, %v302_v39  ;;  %v354_v0 = vadd.f32 %v329_v21, %v298_v55  ;;  %v370_v39 = vld [vmem:[%s3570_s3 + $0x18] sm:$0xff] }
 0x168   :  { %v284_v45 = vpop.permute.xlu1 %283  ;;  %v386_v55 = vld [vmem:[%s3570_s3 + $0x98] sm:$0xff] }
 0x169   :  { %v301_v46 = vadd.f32 %v284_v45, %v217_v43  ;;  %v366_v47 = vmax.f32 %v358_v42, 0.0  ;;  %v362_v13 = vmax.f32 %v354_v0, 0.0  ;;  %v373_v42 = vld [vmem:[%s3570_s3 + $0x30] sm:$0xff]  ;;  %v374_v43 = vld [vmem:[%s3570_s3 + $0x38] sm:$0xff]  ;;  %v376_v45 = vld [vmem:[%s3570_s3 + $0x48] sm:$0xff] }
 0x16a   :  { %v395_v0 = vld [vmem:[%s3570_s3 + $0xe0] sm:$0xff] }
 0x16b   :  { %v357_v51 = vadd.f32 %v344_v15, %v301_v46  ;;  %437 = vrot.lane.b32.xlu0 %v366_v47, %s2395_s23  ;;  %v211_v15 = vadd.f32 %v188_v33, %v125_v7  ;;  %v377_v46 = vld [vmem:[%s3570_s3 + $0x50] sm:$0xff]  ;;  %v378_v47 = vld [vmem:[%s3570_s3 + $0x58] sm:$0xff] }
 0x16c   :  { %v282_v53 = vpop.permute.xlu1 %281  ;;  %v402_v7 = vld [vmem:[%s3570_s3 + $0x118] sm:$0xff] }
 0x16d   :  { %v300_v56 = vadd.f32 %v282_v53, %v216_v52  ;;  %v365_v57 = vmax.f32 %v357_v51, 0.0  ;;  %v382_v51 = vld [vmem:[%s3570_s3 + $0x78] sm:$0xff]  ;;  %v383_v52 = vld [vmem:[%s3570_s3 + $0x80] sm:$0xff]  ;;  %v384_v53 = vld [vmem:[%s3570_s3 + $0x88] sm:$0xff] }
 0x16f   :  { %v356_v59 = vadd.f32 %v339_v17, %v300_v56  ;;  %435 = vrot.lane.b32.xlu1 %v365_v57, %s2395_s23  ;;  %v387_v56 = vld [vmem:[%s3570_s3 + $0xa0] sm:$0xff]  ;;  %v388_v57 = vld [vmem:[%s3570_s3 + $0xa8] sm:$0xff] }
 0x170   :  { %v274_v62 = vpop.permute.xlu0 %273  ;;  %v280_v63 = vpop.permute.xlu1 %279 }
 0x171   :  { %v296_v2 = vadd.f32 %v274_v62, %v212_v58  ;;  %v299_v3 = vadd.f32 %v280_v63, %v215_v60  ;;  %v364_v1 = vmax.f32 %v356_v59, 0.0  ;;  %v389_v58 = vld [vmem:[%s3570_s3 + $0xb0] sm:$0xff]  ;;  %v390_v59 = vld [vmem:[%s3570_s3 + $0xb8] sm:$0xff]  ;;  %v391_v60 = vld [vmem:[%s3570_s3 + $0xc0] sm:$0xff] }
 0x172   :  { %v393_v62 = vld [vmem:[%s3570_s3 + $0xd0] sm:$0xff]  ;;  %v394_v63 = vld [vmem:[%s3570_s3 + $0xd8] sm:$0xff] }
 0x173   :  { %v355_v5 = vadd.f32 %v334_v19, %v299_v3  ;;  %433 = vrot.lane.b32.xlu0 %v364_v1, %s2395_s23  ;;  %v352_v11 = vadd.f32 %v319_v23, %v296_v2  ;;  %v396_v2 = vld [vmem:[%s3570_s3 + $0xe8] sm:$0xff]  ;;  %v397_v3 = vld [vmem:[%s3570_s3 + $0xf0] sm:$0xff]  ;;  %v398_v1 = vld [vmem:[%s3570_s3 + $0xf8] sm:$0xff] }
 0x174   :  { %v276_v8 = vpop.permute.xlu1 %275 }
 0x175   :  { %v297_v12 = vadd.f32 %v276_v8, %v213_v4  ;;  %v363_v14 = vmax.f32 %v355_v5, 0.0  ;;  %v360_v21 = vmax.f32 %v352_v11, 0.0  ;;  %v399_v4 = vld [vmem:[%s3570_s3 + $0x100] sm:$0xff]  ;;  %v400_v5 = vld [vmem:[%s3570_s3 + $0x108] sm:$0xff] }
 0x176   :  { %v403_v8 = vld [vmem:[%s3570_s3 + $0x120] sm:$0xff]  ;;  %v404_v11 = vld [vmem:[%s3570_s3 + $0x128] sm:$0xff] }
 0x177   :  { %v353_v16 = vadd.f32 %v324_v20, %v297_v12  ;;  %429 = vrot.lane.b32.xlu0 %v362_v13, %s2395_s23  ;;  %431 = vrot.lane.b32.xlu1 %v363_v14, %s2395_s23  ;;  %v909_v20 = vld [vmem:[%s3571_s4 + $0x60] sm:$0xff]  ;;  %v405_v12 = vld [vmem:[%s3570_s3 + $0x130] sm:$0xff] }
 0x178   :  { %v272_v17 = vpop.permute.xlu1 %271  ;;  %v406_v13 = vld [vmem:[%s3570_s3 + $0x138] sm:$0xff]  ;;  %v407_v14 = vld [vmem:[%s3570_s3 + $0x140] sm:$0xff] }
 0x179   :  { %v295_v19 = vadd.f32 %v272_v17, %v211_v15  ;;  %v361_v25 = vmax.f32 %v353_v16, 0.0  ;;  %v408_v15 = vld [vmem:[%s3570_s3 + $0x148] sm:$0xff]  ;;  %v409_v16 = vld [vmem:[%s3570_s3 + $0x150] sm:$0xff]  ;;  %v410_v17 = vld [vmem:[%s3570_s3 + $0x158] sm:$0xff] }
 0x17b   :  { %v351_v26 = vadd.f32 %v2539_v22, %v295_v19  ;;  %425 = vrot.lane.b32.xlu0 %v360_v21, %s2395_s23  ;;  %427 = vrot.lane.b32.xlu1 %v361_v25, %s2395_s23  ;;  %v912_v22 = vld [vmem:[%s3571_s4 + $0x78] sm:$0xff]  ;;  %v411_v19 = vld [vmem:[%s3570_s3 + $0x160] sm:$0xff] }
 0x17c   :  { %v412_v21 = vld [vmem:[%s3570_s3 + $0x168] sm:$0xff]  ;;  %v413_v25 = vld [vmem:[%s3570_s3 + $0x170] sm:$0xff] }
 0x17d   :  { %v359_v23 = vmax.f32 %v351_v26, 0.0  ;;  %v414_v26 = vld [vmem:[%s3570_s3 + $0x178] sm:$0xff] }
 0x17f   :  { %1369 = vperm.xlu0 %2361, %v911_v18   ;;  %423 = vrot.lane.b32.xlu1 %v359_v23, %s2395_s23 }
 0x183   :  { %1359 = vperm.xlu0 %2361, %v909_v20   ;;  %1374 = vperm.xlu1 %2362, %v912_v22  }
 0x187   :  { %1364 = vperm.xlu1 %2362, %v910_v27  }
 0x1dd   :  { %v438_v28 = vpop.permute.xlu0 %437 }
 0x1de   :  { %2165 = vmatprep.subr.mxu0 %v438_v28 }
 0x1df   :  { %2166 = vmatpush3.msra.mxu0 %v438_v28 }
 0x1e1   :  { %v436_v30 = vpop.permute.xlu1 %435 }
 0x1e2   :  { %2167 = vmatprep.subr.mxu0 %v436_v30 }
 0x1e3   :  { %2168 = vmatpush3.msra.mxu0 %v436_v30 }
 0x1e5   :  { %v434_v31 = vpop.permute.xlu0 %433 }
 0x1e6   :  { %2169 = vmatprep.subr.mxu0 %v434_v31 }
 0x1e7   :  { %2170 = vmatpush3.msra.mxu0 %v434_v31 }
 0x1e9   :  { %v430_v32 = vpop.permute.xlu0 %429  ;;  %v432_v33 = vpop.permute.xlu1 %431 }
 0x1ea   :  { %2171 = vmatprep.subr.mxu0 %v432_v33 }
 0x1eb   :  { %2172 = vmatpush3.msra.mxu0 %v432_v33 }
 0x1ec   :  { %2173 = vmatprep.subr.mxu0 %v430_v32 }
 0x1ed   :  { %2174 = vmatpush3.msra.mxu0 %v430_v32  ;;  %v428_v34 = vpop.permute.xlu1 %427  ;;  %v426_v35 = vpop.permute.xlu0 %425 }
 0x1ee   :  { %2175 = vmatprep.subr.mxu0 %v428_v34 }
 0x1ef   :  { %2176 = vmatpush3.msra.mxu0 %v428_v34 }
 0x1f0   :  { %2177 = vmatprep.subr.mxu0 %v426_v35 }
 0x1f1   :  { %2178 = vmatpush3.msra.mxu0 %v426_v35  ;;  %v424_v36 = vpop.permute.xlu1 %423 }
 0x1f2   :  { %2179 = vmatprep.subr.mxu0 %v424_v36 }
 0x1f3   :  { %2180 = vmatpush3.msra.mxu0 %v424_v36 }
 0x1f4   :  { %2182 = vmatmul.mubr.msk.f32.vlgmr.msra.gmra.mxu0 %vm447_vm3, %v368_v37 }
 0x1f5   :  { %2184 = vmatprep.mubr.msk.f32.mxu0 %vm447_vm3, %v369_v38 }
 0x1f8   :  { %2185 = vmatmul.mubr.msk.f32.gmra.mxu0 %vm447_vm3, %v370_v39 }
 0x1f9   :  { %2187 = vmatprep.mubr.msk.f32.mxu0 %vm447_vm3, %v371_v40 }
 0x1fc   :  { %2188 = vmatmul.mubr.msk.f32.gmra.mxu0 %vm447_vm3, %v372_v41 }
 0x1fd   :  { %2190 = vmatprep.mubr.msk.f32.mxu0 %vm447_vm3, %v373_v42 }
 0x200   :  { %2191 = vmatmul.mubr.msk.f32.gmra.mxu0 %vm447_vm3, %v374_v43 }
 0x201   :  { %2193 = vmatprep.mubr.msk.f32.mxu0 %vm447_vm3, %v375_v44 }
 0x204   :  { %2194 = vmatmul.mubr.msk.f32.gmra.mxu0 %vm447_vm3, %v376_v45 }
 0x205   :  { %2196 = vmatprep.mubr.msk.f32.mxu0 %vm447_vm3, %v377_v46 }
 0x208   :  { %2197 = vmatmul.mubr.msk.f32.gmra.mxu0 %vm447_vm3, %v378_v47 }
 0x209   :  { %2199 = vmatprep.mubr.msk.f32.mxu0 %vm447_vm3, %v379_v48 }
 0x20c   :  { %2200 = vmatmul.mubr.msk.f32.gmra.mxu0 %vm447_vm3, %v380_v49 }
 0x20d   :  { %2202 = vmatprep.mubr.msk.f32.mxu0 %vm447_vm3, %v381_v50 }
 0x210   :  { %2203 = vmatmul.mubr.msk.f32.gmra.mxu0 %vm447_vm3, %v382_v51 }
 0x211   :  { %2205 = vmatprep.mubr.msk.f32.mxu0 %vm447_vm3, %v383_v52 }
 0x214   :  { %2206 = vmatmul.mubr.msk.f32.gmra.mxu0 %vm447_vm3, %v384_v53 }
 0x215   :  { %2208 = vmatprep.mubr.msk.f32.mxu0 %vm447_vm3, %v385_v54 }
 0x218   :  { %2209 = vmatmul.mubr.msk.f32.gmra.mxu0 %vm447_vm3, %v386_v55 }
 0x219   :  { %2211 = vmatprep.mubr.msk.f32.mxu0 %vm447_vm3, %v387_v56 }
 0x21c   :  { %2212 = vmatmul.mubr.msk.f32.gmra.mxu0 %vm447_vm3, %v388_v57 }
 0x21d   :  { %2214 = vmatprep.mubr.msk.f32.mxu0 %vm447_vm3, %v389_v58 }
 0x220   :  { %2215 = vmatmul.mubr.msk.f32.gmra.mxu0 %vm447_vm3, %v390_v59 }
 0x221   :  { %2217 = vmatprep.mubr.msk.f32.mxu0 %vm447_vm3, %v391_v60 }
 0x224   :  { %2218 = vmatmul.mubr.msk.f32.gmra.mxu0 %vm447_vm3, %v392_v61 }
 0x225   :  { %2220 = vmatprep.mubr.msk.f32.mxu0 %vm447_vm3, %v393_v62 }
 0x228   :  { %2221 = vmatmul.mubr.msk.f32.gmra.mxu0 %vm447_vm3, %v394_v63 }
 0x229   :  { %2223 = vmatprep.mubr.msk.f32.mxu0 %vm447_vm3, %v395_v0 }
 0x22c   :  { %2224 = vmatmul.mubr.msk.f32.gmra.mxu0 %vm447_vm3, %v396_v2 }
 0x22d   :  { %2226 = vmatprep.mubr.msk.f32.mxu0 %vm447_vm3, %v397_v3 }
 0x230   :  { %2227 = vmatmul.mubr.msk.f32.gmra.mxu0 %vm447_vm3, %v398_v1 }
 0x231   :  { %2229 = vmatprep.mubr.msk.f32.mxu0 %vm447_vm3, %v399_v4  ;;  %v2897_v4 = vpop.permute.xlu1 %1374 }
 0x234   :  { %2230 = vmatmul.mubr.msk.f32.gmra.mxu0 %vm447_vm3, %v400_v5 }
 0x235   :  { %2232 = vmatprep.mubr.msk.f32.mxu0 %vm447_vm3, %v401_v6  ;;  %v2905_v6 = vpop.permute.xlu1 %1364 }
 0x238   :  { %2233 = vmatmul.mubr.msk.f32.gmra.mxu0 %vm447_vm3, %v402_v7 }
 0x239   :  { %2235 = vmatprep.mubr.msk.f32.mxu0 %vm447_vm3, %v403_v8 }
 0x23c   :  { %2236 = vmatmul.mubr.msk.f32.gmra.mxu0 %vm447_vm3, %v404_v11 }
 0x23d   :  { %2238 = vmatprep.mubr.msk.f32.mxu0 %vm447_vm3, %v405_v12 }
 0x240   :  { %2239 = vmatmul.mubr.msk.f32.gmra.mxu0 %vm447_vm3, %v406_v13 }
 0x241   :  { %2241 = vmatprep.mubr.msk.f32.mxu0 %vm447_vm3, %v407_v14 }
 0x244   :  { %2242 = vmatmul.mubr.msk.f32.gmra.mxu0 %vm447_vm3, %v408_v15 }
 0x245   :  { %2244 = vmatprep.mubr.msk.f32.mxu0 %vm447_vm3, %v409_v16 }
 0x248   :  { %2245 = vmatmul.mubr.msk.f32.gmra.mxu0 %vm447_vm3, %v410_v17 }
 0x249   :  { %2247 = vmatprep.mubr.msk.f32.mxu0 %vm447_vm3, %v411_v19 }
 0x24c   :  { %2248 = vmatmul.mubr.msk.f32.gmra.mxu0 %vm447_vm3, %v412_v21 }
 0x24d   :  { %2250 = vmatprep.mubr.msk.f32.mxu0 %vm447_vm3, %v413_v25 }
 0x250   :  { %2251 = vmatmul.mubr.msk.f32.gmra.mxu0 %vm447_vm3, %v414_v26 }
 0x2b4   :  { %v2755_v18 = vpop.f32.mrf.mxu0 }
 0x2b5   :  { %916 = vrot.lane.b32.xlu1 %v2755_v18, %s2388_s15 }
 0x2b6   :  { %v2759_v23 = vpop.f32.mrf.mxu0 }
 0x2b8   :  { %v2761_v20 = vpop.f32.mrf.mxu0 }
 0x2b9   :  { %913 = vrot.lane.b32.xlu1 %v2759_v23, %s2388_s15 }
 0x2ba   :  { %v2765_v22 = vpop.f32.mrf.mxu0 }
 0x2bc   :  { %v2767_v27 = vpop.f32.mrf.mxu0 }
 0x2bd   :  { %922 = vrot.lane.b32.xlu1 %v2761_v20, %s2388_s15 }
 0x2be   :  { %v2771_v28 = vpop.f32.mrf.mxu0 }
 0x2c0   :  { %v2773_v30 = vpop.f32.mrf.mxu0 }
 0x2c1   :  { %919 = vrot.lane.b32.xlu1 %v2765_v22, %s2388_s15 }
 0x2c2   :  { %v2777_v31 = vpop.f32.mrf.mxu0 }
 0x2c4   :  { %v2779_v32 = vpop.f32.mrf.mxu0 }
 0x2c5   :  { %928 = vrot.lane.b32.xlu1 %v2767_v27, %s2388_s15 }
 0x2c6   :  { %v2783_v33 = vpop.f32.mrf.mxu0 }
 0x2c8   :  { %v2785_v34 = vpop.f32.mrf.mxu0 }
 0x2c9   :  { %925 = vrot.lane.b32.xlu1 %v2771_v28, %s2388_s15 }
 0x2ca   :  { %v2789_v35 = vpop.f32.mrf.mxu0 }
 0x2cc   :  { %v2791_v36 = vpop.f32.mrf.mxu0 }
 0x2cd   :  { %934 = vrot.lane.b32.xlu1 %v2773_v30, %s2388_s15 }
 0x2ce   :  { %v2795_v37 = vpop.f32.mrf.mxu0 }
 0x2d0   :  { %v2797_v38 = vpop.f32.mrf.mxu0 }
 0x2d1   :  { %931 = vrot.lane.b32.xlu1 %v2777_v31, %s2388_s15  ;;  %958 = vrot.lane.b32.xlu0 %v2797_v38, %s2388_s15 }
 0x2d2   :  { %v2803_v39 = vpop.f32.mrf.mxu0 }
 0x2d4   :  { %v2805_v40 = vpop.f32.mrf.mxu0 }
 0x2d5   :  { %3581 = vst [vmem:[#allocation7_spill] sm:$0xff] %v2805_v40  ;;  %940 = vrot.lane.b32.xlu1 %v2779_v32, %s2388_s15 }
 0x2d6   :  { %v2809_v41 = vpop.f32.mrf.mxu0 }
 0x2d7   :  { %3582 = vst [vmem:[#allocation8_spill] sm:$0xff] %v2809_v41 }
 0x2d8   :  { %v2811_v42 = vpop.f32.mrf.mxu0 }
 0x2d9   :  { %937 = vrot.lane.b32.xlu1 %v2783_v33, %s2388_s15 }
 0x2da   :  { %v2815_v43 = vpop.f32.mrf.mxu0 }
 0x2db   :  { %3583 = vst [vmem:[#allocation9_spill] sm:$0xff] %v2815_v43 }
 0x2dc   :  { %v2817_v44 = vpop.f32.mrf.mxu0 }
 0x2dd   :  { %946 = vrot.lane.b32.xlu1 %v2785_v34, %s2388_s15 }
 0x2de   :  { %v2821_v45 = vpop.f32.mrf.mxu0 }
 0x2e0   :  { %v2823_v46 = vpop.f32.mrf.mxu0 }
 0x2e1   :  { %943 = vrot.lane.b32.xlu1 %v2789_v35, %s2388_s15 }
 0x2e2   :  { %v2827_v47 = vpop.f32.mrf.mxu0 }
 0x2e4   :  { %v2829_v48 = vpop.f32.mrf.mxu0 }
 0x2e5   :  { %952 = vrot.lane.b32.xlu1 %v2791_v36, %s2388_s15 }
 0x2e6   :  { %v2833_v49 = vpop.f32.mrf.mxu0 }
 0x2e8   :  { %v2835_v50 = vpop.f32.mrf.mxu0 }
 0x2e9   :  { %949 = vrot.lane.b32.xlu1 %v2795_v37, %s2388_s15 }
 0x2ea   :  { %v2839_v51 = vpop.f32.mrf.mxu0 }
 0x2ec   :  { %v2841_v52 = vpop.f32.mrf.mxu0 }
 0x2ed   :  { %955 = vrot.lane.b32.xlu1 %v2803_v39, %s2388_s15 }
 0x2ee   :  { %v2845_v53 = vpop.f32.mrf.mxu0 }
 0x2f0   :  { %v2847_v54 = vpop.f32.mrf.mxu0 }
 0x2f2   :  { %v2849_v55 = vpop.f32.mrf.mxu0 }
 0x2f4   :  { %v2851_v56 = vpop.f32.mrf.mxu0 }
 0x2f5   :  { %1108 = vrot.lane.b32.xlu0 %v2851_v56, %s2388_s15 }
 0x2f6   :  { %v2855_v57 = vpop.f32.mrf.mxu0 }
 0x2f7   :  { %1105 = vrot.lane.b32.xlu1 %v2855_v57, %s2388_s15 }
 0x2f8   :  { %v2859_v58 = vpop.f32.mrf.mxu0 }
 0x2f9   :  { %1114 = vrot.lane.b32.xlu0 %v2859_v58, %s2388_s15 }
 0x2fa   :  { %v2863_v59 = vpop.f32.mrf.mxu0 }
 0x2fc   :  { %v2867_v60 = vpop.f32.mrf.mxu0 }
 0x2fd   :  { %1111 = vrot.lane.b32.xlu0 %v2863_v59, %s2388_s15 }
 0x2fe   :  { %v2871_v61 = vpop.f32.mrf.mxu0 }
 0x300   :  { %v2875_v62 = vpop.f32.mrf.mxu0 }
 0x301   :  { %1120 = vrot.lane.b32.xlu0 %v2867_v60, %s2388_s15 }
 0x302   :  { %v2879_v63 = vpop.f32.mrf.mxu0 }
 0x304   :  { %v2883_v0 = vpop.f32.mrf.mxu0 }
 0x305   :  { %1117 = vrot.lane.b32.xlu0 %v2871_v61, %s2388_s15 }
 0x306   :  { %v2887_v2 = vpop.f32.mrf.mxu0 }
 0x308   :  { %v2891_v3 = vpop.f32.mrf.mxu0 }
 0x309   :  { %1126 = vrot.lane.b32.xlu0 %v2875_v62, %s2388_s15 }
 0x30a   :  { %v2895_v1 = vpop.f32.mrf.mxu0 }
 0x30c   :  { %v2901_v5 = vpop.f32.mrf.mxu0 }
 0x30d   :  { %1123 = vrot.lane.b32.xlu0 %v2879_v63, %s2388_s15 }
 0x30e   :  { %v2907_v7 = vpop.f32.mrf.mxu0 }
 0x310   :  { %v2911_v11 = vpop.f32.mrf.mxu0 }
 0x311   :  { %1132 = vrot.lane.b32.xlu0 %v2883_v0, %s2388_s15 }
 0x312   :  { %v2918_v14 = vpop.f32.mrf.mxu0 }
 0x315   :  { %1129 = vrot.lane.b32.xlu0 %v2887_v2, %s2388_s15 }
 0x319   :  { %1138 = vrot.lane.b32.xlu0 %v2891_v3, %s2388_s15 }
 0x31d   :  { %1135 = vrot.lane.b32.xlu0 %v2895_v1, %s2388_s15 }
 0x321   :  { %1144 = vrot.lane.b32.xlu0 %v2901_v5, %s2388_s15 }
 0x325   :  { %1141 = vrot.lane.b32.xlu0 %v2907_v7, %s2388_s15 }
 0x327   :  { %v917_v8 = vpop.permute.xlu1 %916 }
 0x328   :  { %v918_v12 = vsel %vm56_vm1, %v917_v8, %v2755_v18  ;;  %v2933_v8 = vpop.permute.xlu0 %1369 }
 0x329   :  { %1150 = vrot.lane.b32.xlu0 %v2911_v11, %s2388_s15  ;;  %963 = vrot.lane.b32.xlu1 %v918_v12, %s2388_s15 }
 0x32b   :  { %v914_v13 = vpop.permute.xlu1 %913 }
 0x32c   :  { %v915_v15 = vsel %vm56_vm1, %v914_v13, %v2759_v23 }
 0x32d   :  { %1147 = vrot.lane.b32.xlu0 %v2918_v14, %s2388_s15  ;;  %961 = vrot.lane.b32.xlu1 %v915_v15, %s2388_s15  ;;  %v2939_v15 = vpop.permute.xlu0 %1359 }
 0x32f   :  { %v923_v16 = vpop.permute.xlu1 %922 }
 0x330   :  { %v924_v17 = vsel %vm56_vm1, %v923_v16, %v2761_v20 }
 0x331   :  { %967 = vrot.lane.b32.xlu1 %v924_v17, %s2388_s15 }
 0x333   :  { %v920_v19 = vpop.permute.xlu1 %919 }
 0x334   :  { %v921_v21 = vsel %vm56_vm1, %v920_v19, %v2765_v22 }
 0x335   :  { %965 = vrot.lane.b32.xlu1 %v921_v21, %s2388_s15 }
 0x337   :  { %v929_v25 = vpop.permute.xlu1 %928 }
 0x338   :  { %v930_v26 = vsel %vm56_vm1, %v929_v25, %v2767_v27 }
 0x339   :  { %971 = vrot.lane.b32.xlu1 %v930_v26, %s2388_s15 }
 0x33b   :  { %v926_v12 = vpop.permute.xlu1 %925 }
 0x33c   :  { %v927_v13 = vsel %vm56_vm1, %v926_v12, %v2771_v28 }
 0x33d   :  { %969 = vrot.lane.b32.xlu1 %v927_v13, %s2388_s15 }
 0x33f   :  { %v935_v16 = vpop.permute.xlu1 %934 }
 0x340   :  { %v936_v17 = vsel %vm56_vm1, %v935_v16, %v2773_v30 }
 0x341   :  { %975 = vrot.lane.b32.xlu1 %v936_v17, %s2388_s15 }
 0x343   :  { %v959_v19 = vpop.permute.xlu0 %958  ;;  %v932_v21 = vpop.permute.xlu1 %931 }
 0x344   :  { %v933_v25 = vsel %vm56_vm1, %v932_v21, %v2777_v31  ;;  %v960_v26 = vsel %vm56_vm1, %v959_v19, %v2797_v38 }
 0x345   :  { %991 = vrot.lane.b32.xlu0 %v960_v26, %s2388_s15  ;;  %973 = vrot.lane.b32.xlu1 %v933_v25, %s2388_s15 }
 0x347   :  { %v941_v12 = vpop.permute.xlu1 %940 }
 0x348   :  { %v942_v13 = vsel %vm56_vm1, %v941_v12, %v2779_v32 }
 0x349   :  { %979 = vrot.lane.b32.xlu1 %v942_v13, %s2388_s15 }
 0x34b   :  { %v938_v16 = vpop.permute.xlu1 %937 }
 0x34c   :  { %v939_v17 = vsel %vm56_vm1, %v938_v16, %v2783_v33 }
 0x34d   :  { %977 = vrot.lane.b32.xlu1 %v939_v17, %s2388_s15 }
 0x34f   :  { %v947_v21 = vpop.permute.xlu1 %946 }
 0x350   :  { %v948_v19 = vsel %vm56_vm1, %v947_v21, %v2785_v34 }
 0x351   :  { %983 = vrot.lane.b32.xlu1 %v948_v19, %s2388_s15 }
 0x353   :  { %v944_v26 = vpop.permute.xlu1 %943 }
 0x354   :  { %v945_v25 = vsel %vm56_vm1, %v944_v26, %v2789_v35  ;;  %v908_v26 = vld [vmem:[%s3571_s4 + $0x58] sm:$0xff] }
 0x355   :  { %981 = vrot.lane.b32.xlu1 %v945_v25, %s2388_s15 }
 0x357   :  { %v953_v12 = vpop.permute.xlu1 %952 }
 0x358   :  { %v954_v13 = vsel %vm56_vm1, %v953_v12, %v2791_v36 }
 0x359   :  { %987 = vrot.lane.b32.xlu1 %v954_v13, %s2388_s15 }
 0x35b   :  { %v950_v16 = vpop.permute.xlu1 %949 }
 0x35c   :  { %v951_v17 = vsel %vm56_vm1, %v950_v16, %v2795_v37 }
 0x35d   :  { %985 = vrot.lane.b32.xlu1 %v951_v17, %s2388_s15 }
 0x35f   :  { %v956_v21 = vpop.permute.xlu1 %955 }
 0x360   :  { %v957_v19 = vsel %vm56_vm1, %v956_v21, %v2803_v39 }
 0x361   :  { %989 = vrot.lane.b32.xlu1 %v957_v19, %s2388_s15  ;;  %v906_v19 = vld [vmem:[%s3571_s4 + $0x48] sm:$0xff] }
 0x365   :  { %1354 = vperm.xlu1 %2362, %v908_v26  }
 0x367   :  { %v1109_v25 = vpop.permute.xlu0 %1108 }
 0x368   :  { %v1110_v12 = vsel %vm56_vm1, %v1109_v25, %v2851_v56 }
 0x369   :  { %1155 = vrot.lane.b32.xlu0 %v1110_v12, %s2388_s15  ;;  %v1106_v13 = vpop.permute.xlu1 %1105  ;;  %v904_v12 = vld [vmem:[%s3571_s4 + $0x38] sm:$0xff] }
 0x36a   :  { %v1107_v16 = vsel %vm56_vm1, %v1106_v13, %v2855_v57 }
 0x36b   :  { %v1115_v17 = vpop.permute.xlu0 %1114  ;;  %1153 = vrot.lane.b32.xlu1 %v1107_v16, %s2388_s15 }
 0x36c   :  { %v1116_v21 = vsel %vm56_vm1, %v1115_v17, %v2859_v58  ;;  %v902_v17 = vld [vmem:[%s3571_s4 + $0x28] sm:$0xff] }
 0x36d   :  { %1159 = vrot.lane.b32.xlu0 %v1116_v21, %s2388_s15 }
 0x36f   :  { %v1112_v26 = vpop.permute.xlu0 %1111  ;;  %1344 = vperm.xlu1 %2362, %v906_v19  }
 0x370   :  { %v1113_v25 = vsel %vm56_vm1, %v1112_v26, %v2863_v59 }
 0x371   :  { %1157 = vrot.lane.b32.xlu0 %v1113_v25, %s2388_s15 }
 0x373   :  { %v1121_v13 = vpop.permute.xlu0 %1120  ;;  %1334 = vperm.xlu1 %2362, %v904_v12  }
 0x374   :  { %v1122_v16 = vsel %vm56_vm1, %v1121_v13, %v2867_v60 }
 0x375   :  { %1163 = vrot.lane.b32.xlu0 %v1122_v16, %s2388_s15 }
 0x377   :  { %v1118_v21 = vpop.permute.xlu0 %1117  ;;  %1324 = vperm.xlu1 %2362, %v902_v17  }
 0x378   :  { %v1119_v19 = vsel %vm56_vm1, %v1118_v21, %v2871_v61 }
 0x379   :  { %1161 = vrot.lane.b32.xlu0 %v1119_v19, %s2388_s15 }
 0x37b   :  { %v1127_v26 = vpop.permute.xlu0 %1126 }
 0x37c   :  { %v1128_v25 = vsel %vm56_vm1, %v1127_v26, %v2875_v62 }
 0x37d   :  { %1167 = vrot.lane.b32.xlu0 %v1128_v25, %s2388_s15 }
 0x37f   :  { %v1124_v12 = vpop.permute.xlu0 %1123 }
 0x380   :  { %v1125_v13 = vsel %vm56_vm1, %v1124_v12, %v2879_v63 }
 0x381   :  { %1165 = vrot.lane.b32.xlu0 %v1125_v13, %s2388_s15 }
 0x383   :  { %v1133_v16 = vpop.permute.xlu0 %1132 }
 0x384   :  { %v1134_v17 = vsel %vm56_vm1, %v1133_v16, %v2883_v0 }
 0x385   :  { %1171 = vrot.lane.b32.xlu0 %v1134_v17, %s2388_s15 }
 0x387   :  { %v1130_v21 = vpop.permute.xlu0 %1129 }
 0x388   :  { %v1131_v19 = vsel %vm56_vm1, %v1130_v21, %v2887_v2 }
 0x389   :  { %1169 = vrot.lane.b32.xlu0 %v1131_v19, %s2388_s15 }
 0x38b   :  { %v1139_v26 = vpop.permute.xlu0 %1138 }
 0x38c   :  { %v1140_v25 = vsel %vm56_vm1, %v1139_v26, %v2891_v3 }
 0x38d   :  { %1175 = vrot.lane.b32.xlu0 %v1140_v25, %s2388_s15 }
 0x38f   :  { %v1136_v12 = vpop.permute.xlu0 %1135 }
 0x390   :  { %v1137_v13 = vsel %vm56_vm1, %v1136_v12, %v2895_v1 }
 0x391   :  { %1173 = vrot.lane.b32.xlu0 %v1137_v13, %s2388_s15 }
 0x393   :  { %v1145_v16 = vpop.permute.xlu0 %1144 }
 0x394   :  { %v1146_v17 = vsel %vm56_vm1, %v1145_v16, %v2901_v5 }
 0x395   :  { %1179 = vrot.lane.b32.xlu0 %v1146_v17, %s2388_s15  ;;  %v907_v17 = vld [vmem:[%s3571_s4 + $0x50] sm:$0xff] }
 0x397   :  { %v1142_v21 = vpop.permute.xlu0 %1141 }
 0x398   :  { %v1143_v19 = vsel %vm56_vm1, %v1142_v21, %v2907_v7 }
 0x399   :  { %1177 = vrot.lane.b32.xlu0 %v1143_v19, %s2388_s15  ;;  %v905_v19 = vld [vmem:[%s3571_s4 + $0x40] sm:$0xff] }
 0x39b   :  { %v1151_v26 = vpop.permute.xlu0 %1150  ;;  %v3025_v25 = vpop.permute.xlu1 %963 }
 0x39c   :  { %v1152_v12 = vsel %vm56_vm1, %v1151_v26, %v2911_v11 }
 0x39d   :  { %1183 = vrot.lane.b32.xlu0 %v1152_v12, %s2388_s15  ;;  %v903_v12 = vld [vmem:[%s3571_s4 + $0x30] sm:$0xff] }
 0x39f   :  { %v1148_v13 = vpop.permute.xlu0 %1147  ;;  %v3030_v9 = vpop.permute.xlu1 %961 }
 0x3a0   :  { %v1149_v16 = vsel %vm56_vm1, %v1148_v13, %v2918_v14 }
 0x3a1   :  { %1181 = vrot.lane.b32.xlu0 %v1149_v16, %s2388_s15 }
 0x3a3   :  { %v3038_v21 = vpop.permute.xlu1 %967 }
 0x3a5   :  { %1349 = vperm.xlu0 %2361, %v907_v17  }
 0x3a7   :  { %v3043_v26 = vpop.permute.xlu1 %965 }
 0x3a9   :  { %1339 = vperm.xlu0 %2361, %v905_v19  }
 0x3ab   :  { %v972_v13 = vpop.permute.xlu1 %971 }
 0x3ac   :  { %v998_v16 = vsel %vm56_vm1, %v972_v13, %v2767_v27 }
 0x3ad   :  { %1329 = vperm.xlu0 %2361, %v903_v12   ;;  %1035 = vrot.lane.b32.xlu1 %v998_v16, %s2395_s23 }
 0x3af   :  { %v970_v24 = vpop.permute.xlu1 %969 }
 0x3b0   :  { %v997_v17 = vsel %vm56_vm1, %v970_v24, %v2771_v28 }
 0x3b1   :  { %1033 = vrot.lane.b32.xlu0 %v997_v17, %s2395_s23 }
 0x3b3   :  { %v976_v41 = vpop.permute.xlu1 %975 }
 0x3b4   :  { %v1000_v19 = vsel %vm56_vm1, %v976_v41, %v2773_v30 }
 0x3b5   :  { %1039 = vrot.lane.b32.xlu1 %v1000_v19, %s2395_s23 }
 0x3b7   :  { %v974_v40 = vpop.permute.xlu1 %973  ;;  %v992_v16 = vpop.permute.xlu0 %991 }
 0x3b8   :  { %v999_v43 = vsel %vm56_vm1, %v974_v40, %v2777_v31 }
 0x3b9   :  { %1037 = vrot.lane.b32.xlu0 %v999_v43, %s2395_s23 }
 0x3bb   :  { %v980_v27 = vpop.permute.xlu1 %979 }
 0x3bc   :  { %v1002_v12 = vsel %vm56_vm1, %v980_v27, %v2779_v32 }
 0x3bd   :  { %1043 = vrot.lane.b32.xlu1 %v1002_v12, %s2395_s23 }
 0x3bf   :  { %v978_v24 = vpop.permute.xlu1 %977 }
 0x3c0   :  { %v1001_v28 = vsel %vm56_vm1, %v978_v24, %v2783_v33 }
 0x3c1   :  { %1041 = vrot.lane.b32.xlu0 %v1001_v28, %s2395_s23 }
 0x3c3   :  { %v984_v30 = vpop.permute.xlu1 %983 }
 0x3c4   :  { %v1004_v41 = vsel %vm56_vm1, %v984_v30, %v2785_v34  ;;  %v1008_v34 = vsel %vm56_vm1, %v992_v16, %v2797_v38 }
 0x3c5   :  { %1047 = vrot.lane.b32.xlu1 %v1004_v41, %s2395_s23 }
 0x3c7   :  { %v982_v31 = vpop.permute.xlu1 %981 }
 0x3c8   :  { %v1003_v40 = vsel %vm56_vm1, %v982_v31, %v2789_v35 }
 0x3c9   :  { %1045 = vrot.lane.b32.xlu0 %v1003_v40, %s2395_s23 }
 0x3cb   :  { %v988_v32 = vpop.permute.xlu1 %987 }
 0x3cc   :  { %v1006_v43 = vsel %vm56_vm1, %v988_v32, %v2791_v36 }
 0x3cd   :  { %1051 = vrot.lane.b32.xlu1 %v1006_v43, %s2395_s23 }
 0x3cf   :  { %v986_v33 = vpop.permute.xlu1 %985 }
 0x3d0   :  { %v1005_v13 = vsel %vm56_vm1, %v986_v33, %v2795_v37 }
 0x3d1   :  { %1049 = vrot.lane.b32.xlu0 %v1005_v13, %s2395_s23 }
 0x3d3   :  { %v990_v17 = vpop.permute.xlu1 %989 }
 0x3d4   :  { %v1007_v35 = vsel %vm56_vm1, %v990_v17, %v2803_v39  ;;  %v995_v17 = vsel %vm56_vm1, %v3043_v26, %v2765_v22  ;;  %v898_v22 = vld [vmem:[%s3571_s4 + $0x8] sm:$0xff] }
 0x3d5   :  { %1055 = vrot.lane.b32.xlu0 %v1008_v34, %s2395_s23 }
 0x3d9   :  { %1053 = vrot.lane.b32.xlu0 %v1007_v35, %s2395_s23  ;;  %v993_v35 = vsel %vm56_vm1, %v3030_v9, %v2759_v23  ;;  %v1409_v9 = vld [vmem:[%s3572_s5] sm:$0xff] }
 0x3da   :  { %2285 = vmatprep.mubr.f32.mxu1 %v1409_v9 }
 0x3db   :  { %v1156_v36 = vpop.permute.xlu0 %1155 }
 0x3df   :  { %v1160_v19 = vpop.permute.xlu0 %1159 }
 0x3e3   :  { %v1158_v27 = vpop.permute.xlu0 %1157 }
 0x3e4   :  { %v1187_v26 = vsel %vm56_vm1, %v1158_v27, %v2863_v59 }
 0x3e7   :  { %v1164_v12 = vpop.permute.xlu0 %1163 }
 0x3e8   :  { %v1190_v34 = vsel %vm56_vm1, %v1164_v12, %v2867_v60  ;;  %v900_v60 = vld [vmem:[%s3571_s4 + $0x18] sm:$0xff] }
 0x3eb   :  { %v1162_v24 = vpop.permute.xlu0 %1161 }
 0x3ef   :  { %v1168_v37 = vpop.permute.xlu0 %1167 }
 0x3f0   :  { %v1192_v28 = vsel %vm56_vm1, %v1168_v37, %v2875_v62 }
 0x3f1   :  { %1231 = vrot.lane.b32.xlu1 %v1192_v28, %s2396_s26 }
 0x3f3   :  { %v1166_v38 = vpop.permute.xlu0 %1165 }
 0x3f4   :  { %v1191_v30 = vsel %vm56_vm1, %v1166_v38, %v2879_v63 }
 0x3f5   :  { %1229 = vrot.lane.b32.xlu0 %v1191_v30, %s2396_s26 }
 0x3f7   :  { %v1172_v39 = vpop.permute.xlu0 %1171 }
 0x3f8   :  { %v1194_v41 = vsel %vm56_vm1, %v1172_v39, %v2883_v0 }
 0x3f9   :  { %1235 = vrot.lane.b32.xlu1 %v1194_v41, %s2396_s26 }
 0x3fb   :  { %v1170_v31 = vpop.permute.xlu0 %1169 }
 0x3fc   :  { %v1193_v40 = vsel %vm56_vm1, %v1170_v31, %v2887_v2 }
 0x3fd   :  { %1233 = vrot.lane.b32.xlu0 %v1193_v40, %s2396_s26 }
 0x3ff   :  { %v1176_v62 = vpop.permute.xlu0 %1175 }
 0x400   :  { %v1196_v32 = vsel %vm56_vm1, %v1176_v62, %v2891_v3 }
 0x401   :  { %1239 = vrot.lane.b32.xlu1 %v1196_v32, %s2396_s26 }
 0x403   :  { %v1174_v63 = vpop.permute.xlu0 %1173 }
 0x404   :  { %v1195_v43 = vsel %vm56_vm1, %v1174_v63, %v2895_v1 }
 0x405   :  { %1237 = vrot.lane.b32.xlu0 %v1195_v43, %s2396_s26 }
 0x407   :  { %v1180_v0 = vpop.permute.xlu0 %1179 }
 0x408   :  { %v1198_v33 = vsel %vm56_vm1, %v1180_v0, %v2901_v5 }
 0x409   :  { %1243 = vrot.lane.b32.xlu1 %v1198_v33, %s2396_s26 }
 0x40b   :  { %v1178_v2 = vpop.permute.xlu0 %1177 }
 0x40c   :  { %v1197_v13 = vsel %vm56_vm1, %v1178_v2, %v2907_v7  ;;  %v901_v7 = vld [vmem:[%s3571_s4 + $0x20] sm:$0xff] }
 0x40d   :  { %1241 = vrot.lane.b32.xlu0 %v1197_v13, %s2396_s26 }
 0x40f   :  { %v1184_v3 = vpop.permute.xlu0 %1183 }
 0x410   :  { %v1200_v16 = vsel %vm56_vm1, %v1184_v3, %v2911_v11  ;;  %v996_v11 = vsel %vm56_vm1, %v3038_v21, %v2761_v20  ;;  %v1188_v20 = vsel %vm56_vm1, %v1160_v19, %v2859_v58  ;;  %v899_v21 = vld [vmem:[%s3571_s4 + $0x10] sm:$0xff]  ;;  %v3147_v58 = vpop.permute.xlu1 %1354  ;;  %v897_v19 = vld [vmem:[%s3571_s4] sm:$0xff] }
 0x411   :  { %1247 = vrot.lane.b32.xlu1 %v1200_v16, %s2396_s26 }
 0x413   :  { %v1182_v1 = vpop.permute.xlu0 %1181 }
 0x414   :  { %v1199_v5 = vsel %vm56_vm1, %v1182_v1, %v2918_v14  ;;  %v1189_v14 = vsel %vm56_vm1, %v1162_v24, %v2871_v61  ;;  %v994_v61 = vsel %vm56_vm1, %v3025_v25, %v2755_v18  ;;  %v1186_v18 = vsel %vm56_vm1, %v1156_v36, %v2851_v56  ;;  %v1154_v25 = vpop.permute.xlu1 %1153 }
 0x415   :  { %1227 = vrot.lane.b32.xlu1 %v1190_v34, %s2396_s26  ;;  %1245 = vrot.lane.b32.xlu0 %v1199_v5, %s2396_s26  ;;  %v1185_v59 = vsel %vm56_vm1, %v1154_v25, %v2855_v57 }
 0x418   :  { %v3174_v27 = vpop.permute.xlu1 %1344 }
 0x419   :  { %1031 = vrot.lane.b32.xlu1 %v996_v11, %s2395_s23  ;;  %1319 = vperm.xlu0 %2361, %v901_v7  }
 0x41c   :  { %v3178_v24 = vpop.permute.xlu1 %1334 }
 0x41d   :  { %1314 = vperm.xlu1 %2362, %v900_v60   ;;  %1225 = vrot.lane.b32.xlu0 %v1189_v14, %s2396_s26 }
 0x420   :  { %v3168_v23 = vpop.permute.xlu0 %1349  ;;  %v3180_v37 = vpop.permute.xlu1 %1324 }
 0x421   :  { %1223 = vrot.lane.b32.xlu1 %v1188_v20, %s2396_s26  ;;  %1029 = vrot.lane.b32.xlu0 %v995_v17, %s2395_s23 }
 0x424   :  { %v3170_v56 = vpop.permute.xlu0 %1339  ;;  %v3182_v28 = vpop.permute.xlu1 %1035 }
 0x425   :  { %1027 = vrot.lane.b32.xlu1 %v994_v61, %s2395_s23  ;;  %1309 = vperm.xlu0 %2361, %v899_v21  }
 0x428   :  { %v3172_v36 = vpop.permute.xlu0 %1329  ;;  %v1040_v30 = vpop.permute.xlu1 %1039 }
 0x429   :  { %1304 = vperm.xlu1 %2362, %v898_v22   ;;  %1221 = vrot.lane.b32.xlu0 %v1187_v26, %s2396_s26 }
 0x42c   :  { %v3176_v12 = vpop.permute.xlu0 %1033 }
 0x42d   :  { %1219 = vrot.lane.b32.xlu1 %v1186_v18, %s2396_s26  ;;  %1025 = vrot.lane.b32.xlu0 %v993_v35, %s2395_s23 }
 0x42f   :  { %v1044_v41 = vpop.permute.xlu1 %1043 }
 0x430   :  { %v1038_v57 = vpop.permute.xlu0 %1037 }
 0x431   :  { %1299 = vperm.xlu0 %2361, %v897_v19   ;;  %1217 = vrot.lane.b32.xlu1 %v1185_v59, %s2396_s26 }
 0x434   :  { %v1042_v38 = vpop.permute.xlu0 %1041 }
 0x437   :  { %v1048_v40 = vpop.permute.xlu1 %1047 }
 0x438   :  { %v1084_v21 = vmul.f32 %v2509_v29, %v1048_v40  ;;  %v1082_v40 = vmul.f32 %v2509_v29, %v1044_v41  ;;  %v1080_v41 = vmul.f32 %v2509_v29, %v1040_v30 }
 0x43b   :  { %v1046_v39 = vpop.permute.xlu0 %1045 }
 0x43c   :  { %v1083_v35 = vmul.f32 %v2509_v29, %v1046_v39 }
 0x43f   :  { %v1052_v32 = vpop.permute.xlu1 %1051 }
 0x440   :  { %v1086_v34 = vmul.f32 %v2509_v29, %v1052_v32 }
 0x442   :  { %v1102_v61 = vadd.f32 %v2841_v52, %v1086_v34  ;;  %v1100_v52 = vadd.f32 %v2835_v50, %v1084_v21  ;;  %v1098_v50 = vadd.f32 %v2829_v48, %v1082_v40  ;;  %v1078_v48 = vmul.f32 %v2509_v29, %v3182_v28 }
 0x443   :  { %v1050_v31 = vpop.permute.xlu0 %1049 }
 0x444   :  { %v1085_v5 = vmul.f32 %v2509_v29, %v1050_v31  ;;  %v1094_v21 = vadd.f32 %v2817_v44, %v1078_v48  ;;  %v3586_v48 = vld [vmem:[#allocation8_spill] sm:$0xff] }
 0x446   :  { %v1101_v18 = vadd.f32 %v1085_v5, %v2845_v53  ;;  %v1081_v53 = vmul.f32 %v2509_v29, %v1042_v38 }
 0x447   :  { %v1056_v62 = vpop.permute.xlu0 %1055 }
 0x448   :  { %v1088_v1 = vmul.f32 %v2509_v29, %v1056_v62 }
 0x44a   :  { %v1104_v14 = vadd.f32 %v2847_v54, %v1088_v1 }
 0x44b   :  { %v1054_v63 = vpop.permute.xlu0 %1053 }
 0x44c   :  { %v1087_v7 = vmul.f32 %v2509_v29, %v1054_v63 }
 0x44e   :  { %v1103_v25 = vadd.f32 %v1087_v7, %v2849_v55  ;;  %v1099_v55 = vadd.f32 %v1083_v35, %v2839_v51  ;;  %v1097_v7 = vadd.f32 %v1081_v53, %v2833_v49 }
 0x463   :  { %v1232_v43 = vpop.permute.xlu1 %1231 }
 0x467   :  { %v1230_v0 = vpop.permute.xlu0 %1229 }
 0x46b   :  { %v1236_v33 = vpop.permute.xlu1 %1235 }
 0x46f   :  { %v1234_v2 = vpop.permute.xlu0 %1233 }
 0x473   :  { %v1240_v13 = vpop.permute.xlu1 %1239 }
 0x474   :  { %v1276_v54 = vmul.f32 %v2469_v10, %v1240_v13  ;;  %v1274_v13 = vmul.f32 %v2469_v10, %v1236_v33  ;;  %v1079_v33 = vmul.f32 %v2509_v29, %v1038_v57 }
 0x477   :  { %v1238_v3 = vpop.permute.xlu0 %1237 }
 0x478   :  { %v1275_v62 = vmul.f32 %v2469_v10, %v1238_v3  ;;  %v1273_v3 = vmul.f32 %v2469_v10, %v1234_v2  ;;  %v1096_v2 = vadd.f32 %v2823_v46, %v1080_v41 }
 0x47a   :  { %v1291_v34 = vadd.f32 %v1275_v62, %v1099_v55 }
 0x47b   :  { %v1244_v16 = vpop.permute.xlu1 %1243 }
 0x47c   :  { %v1278_v17 = vmul.f32 %v2469_v10, %v1244_v16  ;;  %v1292_v16 = vadd.f32 %v1276_v54, %v1100_v52  ;;  %v1387_v49 = vadd.f32 %v3168_v23, %v1291_v34 }
 0x47e   :  { %v1294_v59 = vadd.f32 %v1278_v17, %v1102_v61  ;;  %v1388_v30 = vadd.f32 %v3147_v58, %v1292_v16  ;;  %v1403_v23 = vmax.f32 %v1387_v49, 0.0 }
 0x47f   :  { %v1242_v11 = vpop.permute.xlu0 %1241 }
 0x480   :  { %v1277_v22 = vmul.f32 %v2469_v10, %v1242_v11  ;;  %v1290_v11 = vadd.f32 %v1274_v13, %v1098_v50  ;;  %v1404_v28 = vmax.f32 %v1388_v30, 0.0 }
 0x482   :  { %v1293_v32 = vadd.f32 %v1277_v22, %v1101_v18  ;;  %v1386_v46 = vadd.f32 %v3174_v27, %v1290_v11 }
 0x483   :  { %v1248_v60 = vpop.permute.xlu1 %1247 }
 0x484   :  { %v1280_v20 = vmul.f32 %v2469_v10, %v1248_v60  ;;  %v1389_v51 = vadd.f32 %v2939_v15, %v1293_v32  ;;  %v1271_v60 = vmul.f32 %v2469_v10, %v1230_v0  ;;  %v1289_v15 = vadd.f32 %v1273_v3, %v1097_v7 }
 0x485   :  { %v1077_v0 = vmul.f32 %v2509_v29, %v3176_v12  ;;  %v1402_v18 = vmax.f32 %v1386_v46, 0.0  ;;  %v1412_v46 = vld [vmem:[%s3572_s5 + $0x18] sm:$0xff] }
 0x486   :  { %v1296_v26 = vadd.f32 %v1280_v20, %v1104_v14  ;;  %v1405_v57 = vmax.f32 %v1389_v51, 0.0 }
 0x487   :  { %v1246_v19 = vpop.permute.xlu0 %1245  ;;  %v1228_v5 = vpop.permute.xlu1 %1227  ;;  %v1093_v27 = vadd.f32 %v1077_v0, %v2821_v45  ;;  %v1413_v0 = vld [vmem:[%s3572_s5 + $0x20] sm:$0xff] }
 0x488   :  { %v1279_v9 = vmul.f32 %v2469_v10, %v1246_v19  ;;  %v1392_v31 = vadd.f32 %v2897_v4, %v1296_v26  ;;  %v1390_v4 = vadd.f32 %v2905_v6, %v1294_v59  ;;  %v1270_v17 = vmul.f32 %v2469_v10, %v1228_v5 }
 0x48a   :  { %v1295_v39 = vadd.f32 %v1279_v9, %v1103_v25  ;;  %v1408_v63 = vmax.f32 %v1392_v31, 0.0  ;;  %v1406_v6 = vmax.f32 %v1390_v4, 0.0  ;;  %v1286_v22 = vadd.f32 %v1270_v17, %v1094_v21  ;;  %v1414_v21 = vld [vmem:[%s3572_s5 + $0x28] sm:$0xff] }
 0x48b   :  { %v1032_v58 = vpop.permute.xlu1 %1031 }
 0x48c   :  { %2253 = vmatprep.subr.mxu1 %v1408_v63  ;;  %v1391_v1 = vadd.f32 %v2933_v8, %v1295_v39  ;;  %v1272_v8 = vmul.f32 %v2469_v10, %v1232_v43  ;;  %v1095_v43 = vadd.f32 %v1079_v33, %v2827_v47  ;;  %v1385_v47 = vadd.f32 %v3170_v56, %v1289_v15 }
 0x48d   :  { %2254 = vmatpush3.msra.mxu1 %v1408_v63  ;;  %v1076_v12 = vmul.f32 %v2509_v29, %v1032_v58  ;;  %v1382_v40 = vadd.f32 %v3180_v37, %v1286_v22  ;;  %v1410_v58 = vld [vmem:[%s3572_s5 + $0x8] sm:$0xff] }
 0x48e   :  { %v1407_v38 = vmax.f32 %v1391_v1, 0.0  ;;  %v1288_v14 = vadd.f32 %v1272_v8, %v1096_v2  ;;  %v1287_v61 = vadd.f32 %v1271_v60, %v1095_v43  ;;  %v1401_v44 = vmax.f32 %v1385_v47, 0.0  ;;  %v3584_v1 = vld [vmem:[#allocation9_spill] sm:$0xff]  ;;  %v1418_v22 = vld [vmem:[%s3572_s5 + $0x48] sm:$0xff] }
 0x48f   :  { %v1398_v63 = vmax.f32 %v1382_v40, 0.0  ;;  %v1417_v47 = vld [vmem:[%s3572_s5 + $0x40] sm:$0xff]  ;;  %v1432_v40 = vld [vmem:[%s3572_s5 + $0xb8] sm:$0xff] }
 0x490   :  { %2255 = vmatprep.subr.mxu1 %v1407_v38  ;;  %v1384_v25 = vadd.f32 %v3178_v24, %v1288_v14  ;;  %v1383_v54 = vadd.f32 %v3172_v36, %v1287_v61  ;;  %v1092_v24 = vadd.f32 %v2811_v42, %v1076_v12  ;;  %v1415_v61 = vld [vmem:[%s3572_s5 + $0x30] sm:$0xff]  ;;  %v1424_v12 = vld [vmem:[%s3572_s5 + $0x78] sm:$0xff] }
 0x491   :  { %2256 = vmatpush3.msra.mxu1 %v1407_v38  ;;  %v3585_v38 = vld [vmem:[#allocation7_spill] sm:$0xff] }
 0x492   :  { %2257 = vmatprep.subr.mxu1 %v1406_v6  ;;  %v1400_v31 = vmax.f32 %v1384_v25, 0.0  ;;  %v1399_v52 = vmax.f32 %v1383_v54, 0.0  ;;  %v1422_v25 = vld [vmem:[%s3572_s5 + $0x68] sm:$0xff]  ;;  %v1427_v54 = vld [vmem:[%s3572_s5 + $0x90] sm:$0xff] }
 0x493   :  { %2258 = vmatpush3.msra.mxu1 %v1406_v6 }
 0x494   :  { %v1320_v20 = vpop.permute.xlu0 %1319  ;;  %2259 = vmatprep.subr.mxu1 %v1405_v57 }
 0x495   :  { %2260 = vmatpush3.msra.mxu1 %v1405_v57 }
 0x496   :  { %2261 = vmatprep.subr.mxu1 %v1404_v28 }
 0x497   :  { %2262 = vmatpush3.msra.mxu1 %v1404_v28  ;;  %v3587_v28 = vmov 0.0  }
 0x498   :  { %v1226_v26 = vpop.permute.xlu0 %1225  ;;  %2263 = vmatprep.subr.mxu1 %v1403_v23  ;;  %v1315_v35 = vpop.permute.xlu1 %1314 }
 0x499   :  { %v1269_v19 = vmul.f32 %v2469_v10, %v1226_v26  ;;  %2264 = vmatpush3.msra.mxu1 %v1403_v23  ;;  %v1416_v23 = vld [vmem:[%s3572_s5 + $0x38] sm:$0xff]  ;;  %v1419_v26 = vld [vmem:[%s3572_s5 + $0x50] sm:$0xff] }
 0x49a   :  { %2265 = vmatprep.subr.mxu1 %v1402_v18 }
 0x49b   :  { %v1285_v56 = vadd.f32 %v1269_v19, %v1093_v27  ;;  %2266 = vmatpush3.msra.mxu1 %v1402_v18  ;;  %v1421_v18 = vld [vmem:[%s3572_s5 + $0x60] sm:$0xff]  ;;  %v1423_v27 = vld [vmem:[%s3572_s5 + $0x70] sm:$0xff] }
 0x49c   :  { %v1030_v59 = vpop.permute.xlu0 %1029  ;;  %2267 = vmatprep.subr.mxu1 %v1401_v44  ;;  %v1224_v9 = vpop.permute.xlu1 %1223  ;;  %v1425_v19 = vld [vmem:[%s3572_s5 + $0x80] sm:$0xff] }
 0x49d   :  { %v1268_v45 = vmul.f32 %v2469_v10, %v1224_v9  ;;  %2268 = vmatpush3.msra.mxu1 %v1401_v44  ;;  %v1381_v62 = vadd.f32 %v1320_v20, %v1285_v56  ;;  %v1075_v53 = vmul.f32 %v2509_v29, %v1030_v59  ;;  %v1411_v20 = vld [vmem:[%s3572_s5 + $0x10] sm:$0xff]  ;;  %v1426_v44 = vld [vmem:[%s3572_s5 + $0x88] sm:$0xff]  ;;  %v1428_v56 = vld [vmem:[%s3572_s5 + $0x98] sm:$0xff] }
 0x49e   :  { %2269 = vmatprep.subr.mxu1 %v1400_v31  ;;  %v1429_v59 = vld [vmem:[%s3572_s5 + $0xa0] sm:$0xff]  ;;  %v1430_v9 = vld [vmem:[%s3572_s5 + $0xa8] sm:$0xff] }
 0x49f   :  { %v1284_v32 = vadd.f32 %v1268_v45, %v1092_v24  ;;  %2270 = vmatpush3.msra.mxu1 %v1400_v31  ;;  %v1397_v37 = vmax.f32 %v1381_v62, 0.0  ;;  %v1091_v4 = vadd.f32 %v1075_v53, %v3584_v1  ;;  %v1431_v31 = vld [vmem:[%s3572_s5 + $0xb0] sm:$0xff] }
 0x4a0   :  { %v1310_v39 = vpop.permute.xlu0 %1309  ;;  %2271 = vmatprep.subr.mxu1 %v1399_v52  ;;  %v1028_v36 = vpop.permute.xlu1 %1027 }
 0x4a1   :  { %2272 = vmatpush3.msra.mxu1 %v1399_v52  ;;  %v1380_v55 = vadd.f32 %v1315_v35, %v1284_v32  ;;  %v1074_v41 = vmul.f32 %v2509_v29, %v1028_v36  ;;  %v1420_v35 = vld [vmem:[%s3572_s5 + $0x58] sm:$0xff] }
 0x4a2   :  { %2273 = vmatprep.subr.mxu1 %v1398_v63 }
 0x4a3   :  { %2274 = vmatpush3.msra.mxu1 %v1398_v63  ;;  %v1396_v42 = vmax.f32 %v1380_v55, 0.0  ;;  %v1090_v51 = vadd.f32 %v3585_v38, %v1074_v41 }
 0x4a4   :  { %v1222_v13 = vpop.permute.xlu0 %1221  ;;  %2275 = vmatprep.subr.mxu1 %v1397_v37  ;;  %v1305_v16 = vpop.permute.xlu1 %1304 }
 0x4a5   :  { %v1267_v50 = vmul.f32 %v2469_v10, %v1222_v13  ;;  %2276 = vmatpush3.msra.mxu1 %v1397_v37 }
 0x4a6   :  { %2277 = vmatprep.subr.mxu1 %v1396_v42 }
 0x4a7   :  { %v1283_v3 = vadd.f32 %v1267_v50, %v1091_v4  ;;  %2278 = vmatpush3.msra.mxu1 %v1396_v42 }
 0x4a8   :  { %v1026_v34 = vpop.permute.xlu0 %1025  ;;  %v1220_v5 = vpop.permute.xlu1 %1219 }
 0x4a9   :  { %v1073_v33 = vmul.f32 %v2509_v29, %v1026_v34  ;;  %v1266_v7 = vmul.f32 %v2469_v10, %v1220_v5  ;;  %v1379_v8 = vadd.f32 %v1310_v39, %v1283_v3 }
 0x4ab   :  { %v1282_v11 = vadd.f32 %v1266_v7, %v1090_v51  ;;  %v1395_v6 = vmax.f32 %v1379_v8, 0.0  ;;  %v1089_v2 = vadd.f32 %v1073_v33, %v3586_v48 }
 0x4ac   :  { %v1218_v30 = vpop.permute.xlu1 %1217  ;;  %v1300_v43 = vpop.permute.xlu0 %1299 }
 0x4ad   :  { %v1265_v60 = vmul.f32 %v2469_v10, %v1218_v30  ;;  %2279 = vmatprep.subr.mxu1 %v1395_v6  ;;  %v1378_v15 = vadd.f32 %v1305_v16, %v1282_v11 }
 0x4ae   :  { %2280 = vmatpush3.msra.mxu1 %v1395_v6 }
 0x4af   :  { %v1281_v57 = vadd.f32 %v1265_v60, %v1089_v2  ;;  %v1394_v49 = vmax.f32 %v1378_v15, 0.0 }
 0x4b1   :  { %2281 = vmatprep.subr.mxu1 %v1394_v49  ;;  %v1377_v14 = vadd.f32 %v1300_v43, %v1281_v57 }
 0x4b2   :  { %2282 = vmatpush3.msra.mxu1 %v1394_v49 }
 0x4b3   :  { %v1393_v17 = vmax.f32 %v1377_v14, 0.0 }
 0x4b5   :  { %2283 = vmatprep.subr.mxu1 %v1393_v17 }
 0x4b6   :  { %2284 = vmatpush3.msra.mxu1 %v1393_v17 }
 0x4b7   :  { %2286 = vmatmul.mubr.f32.vlgmr.msra.gmra.mxu1 %v1410_v58  ;;  %2321 = vmatprep.subr.mxu1 %v3587_v28 }
 0x4b8   :  { %2288 = vmatprep.mubr.f32.mxu1 %v1411_v20 }
 0x4bb   :  { %2289 = vmatmul.mubr.f32.gmra.mxu1 %v1412_v46 }
 0x4bc   :  { %2291 = vmatprep.mubr.f32.mxu1 %v1413_v0 }
 0x4bf   :  { %2292 = vmatmul.mubr.f32.gmra.mxu1 %v1414_v21  ;;  %v1625_v21 = vld [vmem:[%s3573_s6 + $0x38] sm:$0xff] }
 0x4c0   :  { %2294 = vmatprep.mubr.f32.mxu1 %v1415_v61 }
 0x4c3   :  { %2295 = vmatmul.mubr.f32.gmra.mxu1 %v1416_v23 }
 0x4c4   :  { %2297 = vmatprep.mubr.f32.mxu1 %v1417_v47  ;;  %v1623_v47 = vld [vmem:[%s3573_s6 + $0x28] sm:$0xff] }
 0x4c7   :  { %2298 = vmatmul.mubr.f32.gmra.mxu1 %v1418_v22 }
 0x4c8   :  { %2300 = vmatprep.mubr.f32.mxu1 %v1419_v26 }
 0x4cb   :  { %2301 = vmatmul.mubr.f32.gmra.mxu1 %v1420_v35  ;;  %v1621_v35 = vld [vmem:[%s3573_s6 + $0x18] sm:$0xff] }
 0x4cc   :  { %2303 = vmatprep.mubr.f32.mxu1 %v1421_v18 }
 0x4cf   :  { %2304 = vmatmul.mubr.f32.gmra.mxu1 %v1422_v25 }
 0x4d0   :  { %2306 = vmatprep.mubr.f32.mxu1 %v1423_v27 }
 0x4d3   :  { %2307 = vmatmul.mubr.f32.gmra.mxu1 %v1424_v12 }
 0x4d4   :  { %2309 = vmatprep.mubr.f32.mxu1 %v1425_v19 }
 0x4d7   :  { %2310 = vmatmul.mubr.f32.gmra.mxu1 %v1426_v44 }
 0x4d8   :  { %2312 = vmatprep.mubr.f32.mxu1 %v1427_v54 }
 0x4db   :  { %2313 = vmatmul.mubr.f32.gmra.mxu1 %v1428_v56 }
 0x4dc   :  { %2315 = vmatprep.mubr.f32.mxu1 %v1429_v59 }
 0x4df   :  { %2316 = vmatmul.mubr.f32.gmra.mxu1 %v1430_v9 }
 0x4e0   :  { %2318 = vmatprep.mubr.f32.mxu1 %v1431_v31  ;;  %v1624_v31 = vld [vmem:[%s3573_s6 + $0x30] sm:$0xff] }
 0x4e3   :  { %2319 = vmatmul.mubr.f32.gmra.mxu1 %v1432_v40  ;;  %v1622_v40 = vld [vmem:[%s3573_s6 + $0x20] sm:$0xff] }
 0x4e4   :  { %2337 = vmatprep.mubr.msk.f32.mxu1 %vm2397_vm4, %v3587_v28 }
 0x577   :  { %v3315_v24 = vpop.f32.mrf.mxu1 }
 0x579   :  { %v3317_v45 = vpop.f32.mrf.mxu1 }
 0x57b   :  { %v3319_v52 = vpop.f32.mrf.mxu1 }
 0x57c   :  { %1635 = vrot.lane.b32.xlu1 %v3319_v52, %s2388_s15 }
 0x57d   :  { %v3323_v62 = vpop.f32.mrf.mxu1 }
 0x57f   :  { %v3325_v32 = vpop.f32.mrf.mxu1 }
 0x580   :  { %1641 = vrot.lane.b32.xlu1 %v3325_v32, %s2388_s15 }
 0x581   :  { %v3329_v39 = vpop.f32.mrf.mxu1 }
 0x583   :  { %v3331_v36 = vpop.f32.mrf.mxu1 }
 0x584   :  { %1638 = vrot.lane.b32.xlu1 %v3329_v39, %s2388_s15  ;;  %1647 = vrot.lane.b32.xlu0 %v3331_v36, %s2388_s15 }
 0x585   :  { %v3337_v63 = vpop.f32.mrf.mxu1 }
 0x587   :  { %v3339_v53 = vpop.f32.mrf.mxu1 }
 0x588   :  { %1644 = vrot.lane.b32.xlu1 %v3337_v63, %s2388_s15 }
 0x589   :  { %v3343_v55 = vpop.f32.mrf.mxu1 }
 0x58b   :  { %v3345_v37 = vpop.f32.mrf.mxu1 }
 0x58c   :  { %1632 = vrot.lane.b32.xlu1 %v3323_v62, %s2388_s15 }
 0x58d   :  { %v3349_v42 = vpop.f32.mrf.mxu1 }
 0x58f   :  { %v3351_v13 = vpop.f32.mrf.mxu1 }
 0x590   :  { %1629 = vrot.lane.b32.xlu1 %v3315_v24, %s2388_s15 }
 0x591   :  { %v3355_v16 = vpop.f32.mrf.mxu1 }
 0x593   :  { %v3357_v1 = vpop.f32.mrf.mxu1 }
 0x594   :  { %1626 = vrot.lane.b32.xlu1 %v3317_v45, %s2388_s15 }
 0x595   :  { %v3361_v4 = vpop.f32.mrf.mxu1 }
 0x597   :  { %v3363_v41 = vpop.f32.mrf.mxu1 }
 0x599   :  { %v3365_v50 = vpop.f32.mrf.mxu1 }
 0x59a   :  { %1722 = vrot.lane.b32.xlu1 %v3365_v50, %s2388_s15 }
 0x59b   :  { %v3369_v3 = vpop.f32.mrf.mxu1 }
 0x59d   :  { %v3371_v34 = vpop.f32.mrf.mxu1 }
 0x59f   :  { %v3373_v5 = vpop.f32.mrf.mxu1 }
 0x5a0   :  { %1737 = vrot.lane.b32.xlu0 %v3373_v5, %s2388_s15 }
 0x5a1   :  { %v3377_v38 = vpop.f32.mrf.mxu1 }
 0x5a3   :  { %v3381_v51 = vpop.f32.mrf.mxu1 }
 0x5a4   :  { %1734 = vrot.lane.b32.xlu0 %v3377_v38, %s2388_s15 }
 0x5a5   :  { %v3385_v33 = vpop.f32.mrf.mxu1 }
 0x5a8   :  { %1743 = vrot.lane.b32.xlu0 %v3381_v51, %s2388_s15 }
 0x5ac   :  { %1740 = vrot.lane.b32.xlu0 %v3385_v33, %s2388_s15 }
 0x5b0   :  { %1731 = vrot.lane.b32.xlu0 %v3369_v3, %s2388_s15 }
 0x5b4   :  { %1728 = vrot.lane.b32.xlu0 %v3371_v34, %s2388_s15 }
 0x5b8   :  { %1725 = vrot.lane.b32.xlu0 %v3363_v41, %s2388_s15 }
 0x5ee   :  { %v1636_v7 = vpop.permute.xlu1 %1635 }
 0x5ef   :  { %v1637_v8 = vsel %vm56_vm1, %v1636_v7, %v3319_v52  ;;  %v1620_v7 = vld [vmem:[%s3573_s6 + $0x10] sm:$0xff] }
 0x5f0   :  { %1656 = vrot.lane.b32.xlu1 %v1637_v8, %s2388_s15 }
 0x5f2   :  { %v1642_v11 = vpop.permute.xlu1 %1641 }
 0x5f3   :  { %v1643_v6 = vsel %vm56_vm1, %v1642_v11, %v3325_v32 }
 0x5f4   :  { %1660 = vrot.lane.b32.xlu1 %v1643_v6, %s2388_s15 }
 0x5f6   :  { %v1639_v30 = vpop.permute.xlu1 %1638  ;;  %v1648_v48 = vpop.permute.xlu0 %1647 }
 0x5f7   :  { %v1640_v2 = vsel %vm56_vm1, %v1639_v30, %v3329_v39  ;;  %v1649_v60 = vsel %vm56_vm1, %v1648_v48, %v3331_v36 }
 0x5f8   :  { %1658 = vrot.lane.b32.xlu1 %v1640_v2, %s2388_s15  ;;  %1664 = vrot.lane.b32.xlu0 %v1649_v60, %s2388_s15 }
 0x5fa   :  { %v1645_v15 = vpop.permute.xlu1 %1644 }
 0x5fb   :  { %v1646_v57 = vsel %vm56_vm1, %v1645_v15, %v3337_v63 }
 0x5fc   :  { %1662 = vrot.lane.b32.xlu1 %v1646_v57, %s2388_s15 }
 0x5fe   :  { %v1633_v49 = vpop.permute.xlu1 %1632 }
 0x5ff   :  { %v1634_v43 = vsel %vm56_vm1, %v1633_v49, %v3323_v62 }
 0x600   :  { %1654 = vrot.lane.b32.xlu1 %v1634_v43, %s2388_s15 }
 0x602   :  { %v1630_v14 = vpop.permute.xlu1 %1629 }
 0x603   :  { %v1631_v17 = vsel %vm56_vm1, %v1630_v14, %v3315_v24 }
 0x604   :  { %1652 = vrot.lane.b32.xlu1 %v1631_v17, %s2388_s15 }
 0x606   :  { %v1627_v58 = vpop.permute.xlu1 %1626 }
 0x607   :  { %v1628_v20 = vsel %vm56_vm1, %v1627_v58, %v3317_v45 }
 0x608   :  { %1650 = vrot.lane.b32.xlu1 %v1628_v20, %s2388_s15 }
 0x60c   :  { %v1723_v46 = vpop.permute.xlu1 %1722 }
 0x60d   :  { %v1724_v0 = vsel %vm56_vm1, %v1723_v46, %v3365_v50 }
 0x60e   :  { %1746 = vrot.lane.b32.xlu1 %v1724_v0, %s2388_s15 }
 0x612   :  { %1855 = vperm.xlu1 %2362, %v1625_v21   ;;  %v1738_v61 = vpop.permute.xlu0 %1737 }
 0x613   :  { %v1739_v23 = vsel %vm56_vm1, %v1738_v61, %v3373_v5 }
 0x614   :  { %1756 = vrot.lane.b32.xlu0 %v1739_v23, %s2388_s15 }
 0x616   :  { %1845 = vperm.xlu1 %2362, %v1623_v47   ;;  %v1735_v22 = vpop.permute.xlu0 %1734 }
 0x617   :  { %v1736_v26 = vsel %vm56_vm1, %v1735_v22, %v3377_v38 }
 0x618   :  { %1754 = vrot.lane.b32.xlu0 %v1736_v26, %s2388_s15 }
 0x61a   :  { %1835 = vperm.xlu1 %2362, %v1621_v35   ;;  %v1744_v18 = vpop.permute.xlu0 %1743 }
 0x61b   :  { %v1745_v25 = vsel %vm56_vm1, %v1744_v18, %v3381_v51 }
 0x61c   :  { %1760 = vrot.lane.b32.xlu0 %v1745_v25, %s2388_s15 }
 0x61e   :  { %v1741_v27 = vpop.permute.xlu0 %1740 }
 0x61f   :  { %v1742_v12 = vsel %vm56_vm1, %v1741_v27, %v3385_v33 }
 0x620   :  { %1758 = vrot.lane.b32.xlu0 %v1742_v12, %s2388_s15 }
 0x622   :  { %v1732_v19 = vpop.permute.xlu0 %1731 }
 0x623   :  { %v1733_v44 = vsel %vm56_vm1, %v1732_v19, %v3369_v3 }
 0x624   :  { %1752 = vrot.lane.b32.xlu0 %v1733_v44, %s2388_s15 }
 0x626   :  { %v1729_v54 = vpop.permute.xlu0 %1728 }
 0x627   :  { %v1730_v56 = vsel %vm56_vm1, %v1729_v54, %v3371_v34 }
 0x628   :  { %1750 = vrot.lane.b32.xlu0 %v1730_v56, %s2388_s15 }
 0x62a   :  { %v1726_v59 = vpop.permute.xlu0 %1725 }
 0x62b   :  { %v1727_v9 = vsel %vm56_vm1, %v1726_v59, %v3363_v41 }
 0x62c   :  { %1748 = vrot.lane.b32.xlu0 %v1727_v9, %s2388_s15 }
 0x630   :  { %1850 = vperm.xlu0 %2361, %v1624_v31  }
 0x634   :  { %1840 = vperm.xlu0 %2361, %v1622_v40  }
 0x638   :  { %1830 = vperm.xlu0 %2361, %v1620_v7  }
 0x662   :  { %v1657_v8 = vpop.permute.xlu1 %1656 }
 0x663   :  { %v1669_v11 = vsel %vm56_vm1, %v1657_v8, %v3319_v52 }
 0x664   :  { %1688 = vrot.lane.b32.xlu1 %v1669_v11, %s2395_s23 }
 0x666   :  { %v1661_v6 = vpop.permute.xlu1 %1660 }
 0x667   :  { %v1671_v30 = vsel %vm56_vm1, %v1661_v6, %v3325_v32 }
 0x668   :  { %1692 = vrot.lane.b32.xlu1 %v1671_v30, %s2395_s23 }
 0x66a   :  { %v1659_v48 = vpop.permute.xlu1 %1658  ;;  %v1665_v52 = vpop.permute.xlu0 %1664 }
 0x66b   :  { %v1670_v57 = vsel %vm56_vm1, %v1659_v48, %v3329_v39  ;;  %v1673_v49 = vsel %vm56_vm1, %v1665_v52, %v3331_v36 }
 0x66e   :  { %v1663_v2 = vpop.permute.xlu1 %1662 }
 0x66f   :  { %v1672_v32 = vsel %vm56_vm1, %v1663_v2, %v3337_v63 }
 0x672   :  { %v1655_v60 = vpop.permute.xlu1 %1654 }
 0x673   :  { %v1668_v15 = vsel %vm56_vm1, %v1655_v60, %v3323_v62 }
 0x674   :  { %1686 = vrot.lane.b32.xlu0 %v1668_v15, %s2395_s23 }
 0x676   :  { %v1653_v36 = vpop.permute.xlu1 %1652 }
 0x678   :  { %1690 = vrot.lane.b32.xlu0 %v1670_v57, %s2395_s23 }
 0x67a   :  { %v1651_v21 = vpop.permute.xlu1 %1650 }
 0x67c   :  { %1696 = vrot.lane.b32.xlu0 %v1673_v49, %s2395_s23 }
 0x680   :  { %1694 = vrot.lane.b32.xlu0 %v1672_v32, %s2395_s23  ;;  %v1747_v23 = vpop.permute.xlu1 %1746 }
 0x681   :  { %v1762_v47 = vsel %vm56_vm1, %v1747_v23, %v3365_v50 }
 0x686   :  { %v1757_v43 = vpop.permute.xlu0 %1756 }
 0x68a   :  { %v1755_v62 = vpop.permute.xlu0 %1754 }
 0x68b   :  { %v1766_v14 = vsel %vm56_vm1, %v1755_v62, %v3377_v38  ;;  %v1767_v38 = vsel %vm56_vm1, %v1757_v43, %v3373_v5  ;;  %v1618_v5 = vld [vmem:[%s3573_s6] sm:$0xff] }
 0x68c   :  { %1786 = vrot.lane.b32.xlu0 %v1766_v14, %s2396_s26 }
 0x68d   :  { %v1856_v35 = vpop.permute.xlu1 %1855 }
 0x68e   :  { %v1761_v39 = vpop.permute.xlu0 %1760 }
 0x691   :  { %v1846_v25 = vpop.permute.xlu1 %1845 }
 0x692   :  { %v1759_v17 = vpop.permute.xlu0 %1758 }
 0x693   :  { %v1768_v58 = vsel %vm56_vm1, %v1759_v17, %v3385_v33  ;;  %v1666_v33 = vsel %vm56_vm1, %v1651_v21, %v3317_v45  ;;  %v1619_v45 = vld [vmem:[%s3573_s6 + $0x8] sm:$0xff] }
 0x694   :  { %1790 = vrot.lane.b32.xlu0 %v1768_v58, %s2396_s26 }
 0x695   :  { %v1836_v12 = vpop.permute.xlu1 %1835 }
 0x696   :  { %v1753_v20 = vpop.permute.xlu0 %1752 }
 0x697   :  { %v1765_v63 = vsel %vm56_vm1, %v1753_v20, %v3369_v3  ;;  %v1769_v3 = vsel %vm56_vm1, %v1761_v39, %v3381_v51 }
 0x698   :  { %1784 = vrot.lane.b32.xlu1 %v1765_v63, %s2396_s26 }
 0x69a   :  { %v1751_v46 = vpop.permute.xlu0 %1750 }
 0x69b   :  { %v1764_v0 = vsel %vm56_vm1, %v1751_v46, %v3371_v34  ;;  %v1667_v34 = vsel %vm56_vm1, %v1653_v36, %v3315_v24 }
 0x69c   :  { %1788 = vrot.lane.b32.xlu1 %v1767_v38, %s2396_s26  ;;  %1782 = vrot.lane.b32.xlu0 %v1764_v0, %s2396_s26 }
 0x69e   :  { %v1749_v61 = vpop.permute.xlu0 %1748 }
 0x69f   :  { %v1763_v51 = vsel %vm56_vm1, %v1749_v61, %v3363_v41 }
 0x6a0   :  { %1792 = vrot.lane.b32.xlu1 %v1769_v3, %s2396_s26  ;;  %1682 = vrot.lane.b32.xlu0 %v1666_v33, %s2395_s23 }
 0x6a4   :  { %1684 = vrot.lane.b32.xlu1 %v1667_v34, %s2395_s23  ;;  %1820 = vperm.xlu0 %2361, %v1618_v5  }
 0x6a8   :  { %1825 = vperm.xlu1 %2362, %v1619_v45  }
 0x6ab   :  { %v1851_v24 = vpop.permute.xlu0 %1850 }
 0x6ac   :  { %1780 = vrot.lane.b32.xlu1 %v1763_v51, %s2396_s26 }
 0x6af   :  { %v1841_v22 = vpop.permute.xlu0 %1840 }
 0x6b0   :  { %1778 = vrot.lane.b32.xlu1 %v1762_v47, %s2396_s26 }
 0x6b3   :  { %v1831_v26 = vpop.permute.xlu0 %1830 }
 0x6d6   :  { %v1689_v19 = vpop.permute.xlu1 %1688 }
 0x6d7   :  { %v1709_v48 = vmul.f32 %v2509_v29, %v1689_v19 }
 0x6d9   :  { %v1717_v17 = vadd.f32 %v3345_v37, %v1709_v48 }
 0x6da   :  { %v1693_v54 = vpop.permute.xlu1 %1692 }
 0x6db   :  { %v1711_v31 = vmul.f32 %v2509_v29, %v1693_v54 }
 0x6dd   :  { %v1719_v2 = vadd.f32 %v3351_v13, %v1711_v31 }
 0x6e6   :  { %v1687_v18 = vpop.permute.xlu0 %1686 }
 0x6e7   :  { %v1708_v32 = vmul.f32 %v2509_v29, %v1687_v18 }
 0x6e9   :  { %v1716_v20 = vadd.f32 %v1708_v32, %v3349_v42 }
 0x6ea   :  { %v1691_v27 = vpop.permute.xlu0 %1690 }
 0x6eb   :  { %v1710_v11 = vmul.f32 %v2509_v29, %v1691_v27 }
 0x6ed   :  { %v1718_v62 = vadd.f32 %v1710_v11, %v3355_v16 }
 0x6ee   :  { %v1697_v41 = vpop.permute.xlu0 %1696 }
 0x6ef   :  { %v1713_v7 = vmul.f32 %v2509_v29, %v1697_v41 }
 0x6f1   :  { %v1721_v15 = vadd.f32 %v3357_v1, %v1713_v7  ;;  %v1948_v7 = vld [vmem:[#allocation2] sm:$0x1] }
 0x6f2   :  { %v1695_v44 = vpop.permute.xlu0 %1694 }
 0x6f3   :  { %v1712_v9 = vmul.f32 %v2509_v29, %v1695_v44 }
 0x6f5   :  { %v1720_v6 = vadd.f32 %v1712_v9, %v3361_v4 }
 0x6fe   :  { %v1787_v56 = vpop.permute.xlu0 %1786 }
 0x6ff   :  { %v1806_v57 = vmul.f32 %v2469_v10, %v1787_v56 }
 0x701   :  { %v1814_v13 = vadd.f32 %v1806_v57, %v1718_v62 }
 0x703   :  { %v1862_v0 = vadd.f32 %v1841_v22, %v1814_v13 }
 0x705   :  { %v1870_v37 = vmax.f32 %v1862_v0, 0.0 }
 0x706   :  { %v1791_v50 = vpop.permute.xlu0 %1790 }
 0x707   :  { %v1808_v8 = vmul.f32 %v2469_v10, %v1791_v50 }
 0x709   :  { %v1816_v52 = vadd.f32 %v1808_v8, %v1720_v6 }
 0x70a   :  { %v1785_v59 = vpop.permute.xlu1 %1784 }
 0x70b   :  { %v1805_v4 = vmul.f32 %v2469_v10, %v1785_v59  ;;  %v1864_v58 = vadd.f32 %v1851_v24, %v1816_v52 }
 0x70d   :  { %v1813_v63 = vadd.f32 %v1805_v4, %v1717_v17  ;;  %v1872_v21 = vmax.f32 %v1864_v58, 0.0 }
 0x70e   :  { %v1789_v40 = vpop.permute.xlu1 %1788  ;;  %v1783_v43 = vpop.permute.xlu0 %1782 }
 0x70f   :  { %v1807_v30 = vmul.f32 %v2469_v10, %v1789_v40  ;;  %v1804_v1 = vmul.f32 %v2469_v10, %v1783_v43  ;;  %v1861_v16 = vadd.f32 %v1836_v12, %v1813_v63  ;;  %v3588_v43 = vld [vmem:[#allocation6_spill] sm:$0xff] }
 0x711   :  { %v1815_v14 = vadd.f32 %v1807_v30, %v1719_v2  ;;  %v1812_v33 = vadd.f32 %v1804_v1, %v1716_v20  ;;  %v1869_v42 = vmax.f32 %v1861_v16, 0.0 }
 0x712   :  { %v1793_v60 = vpop.permute.xlu1 %1792  ;;  %v1683_v23 = vpop.permute.xlu0 %1682 }
 0x713   :  { %v1809_v49 = vmul.f32 %v2469_v10, %v1793_v60  ;;  %v1863_v46 = vadd.f32 %v1846_v25, %v1815_v14  ;;  %v1860_v5 = vadd.f32 %v1831_v26, %v1812_v33  ;;  %v1706_v24 = vmul.f32 %v2509_v29, %v1683_v23 }
 0x715   :  { %v1817_v39 = vadd.f32 %v1809_v49, %v1721_v15  ;;  %v1871_v3 = vmax.f32 %v1863_v46, 0.0  ;;  %v1868_v45 = vmax.f32 %v1860_v5, 0.0  ;;  %v1714_v25 = vadd.f32 %v1706_v24, %v3343_v55 }
 0x716   :  { %v1685_v34 = vpop.permute.xlu1 %1684 }
 0x717   :  { %v1865_v36 = vadd.f32 %v1856_v35, %v1817_v39  ;;  %v1707_v51 = vmul.f32 %v2509_v29, %v1685_v34 }
 0x719   :  { %v1873_v38 = vmax.f32 %v1865_v36, 0.0  ;;  %v1715_v22 = vadd.f32 %v3339_v53, %v1707_v51  ;;  %v1874_v53 = vld [vmem:[%s3574_s7] sm:$0x7]  ;;  %s2398_s7 = smov [#allocation3]  }
 0x71b   :  { %2322 = vmatpush3.msra.mxu1 %v1873_v38 }
 0x71c   :  { %2323 = vmatprep.subr.mxu1 %v3587_v28 }
 0x71d   :  { %2324 = vmatpush3.msra.mxu1 %v1872_v21 }
 0x71e   :  { %2325 = vmatprep.subr.mxu1 %v3587_v28 }
 0x71f   :  { %2326 = vmatpush3.msra.mxu1 %v1871_v3  ;;  %v1821_v44 = vpop.permute.xlu0 %1820 }
 0x720   :  { %2327 = vmatprep.subr.mxu1 %v3587_v28 }
 0x721   :  { %2328 = vmatpush3.msra.mxu1 %v1870_v37 }
 0x722   :  { %2329 = vmatprep.subr.mxu1 %v3587_v28 }
 0x723   :  { %v1826_v61 = vpop.permute.xlu1 %1825  ;;  %2330 = vmatpush3.msra.mxu1 %v1869_v42 }
 0x724   :  { %2331 = vmatprep.subr.mxu1 %v3587_v28 }
 0x725   :  { %2332 = vmatpush3.msra.mxu1 %v1868_v45 }
 0x726   :  { %2333 = vmatprep.subr.mxu1 %v3587_v28 }
 0x727   :  { %v1781_v47 = vpop.permute.xlu1 %1780 }
 0x728   :  { %v1803_v26 = vmul.f32 %v2469_v10, %v1781_v47 }
 0x72a   :  { %v1811_v35 = vadd.f32 %v1803_v26, %v1715_v22 }
 0x72b   :  { %v1779_v18 = vpop.permute.xlu1 %1778 }
 0x72c   :  { %v1859_v27 = vadd.f32 %v1826_v61, %v1811_v35  ;;  %v1802_v12 = vmul.f32 %v2469_v10, %v1779_v18 }
 0x72e   :  { %v1867_v41 = vmax.f32 %v1859_v27, 0.0  ;;  %v1810_v19 = vadd.f32 %v1802_v12, %v1714_v25 }
 0x730   :  { %v1858_v54 = vadd.f32 %v1821_v44, %v1810_v19  ;;  %2334 = vmatpush3.msra.mxu1 %v1867_v41 }
 0x731   :  { %2335 = vmatprep.subr.mxu1 %v3587_v28 }
 0x732   :  { %v1866_v56 = vmax.f32 %v1858_v54, 0.0 }
 0x734   :  { %2336 = vmatpush3.msra.mxu1 %v1866_v56 }
 0x735   :  { %2338 = vmatmul.mubr.msk.f32.vlgmr.msra.gmra.mxu1 %vm447_vm3, %v1874_v53 }
 0x7f5   :  { %v1944_v59 = vpop.f32.mrf.mxu1 }
 0x7f6   :  { %1949 = vrot.lane.b32.xlu0 %v1944_v59, %s2388_s15  ;;  %v1965_v55 = vrot.slane %v1944_v59, 2 }
 0x7f7   :  { %v2339_v50 = vpop.f32.mrf.mxu1 }
 0x7f8   :  { %1967 = vrot.lane.b32.xlu1 %v1965_v55, %s2388_s15 }
 0x868   :  { %v1950_v9 = vpop.permute.xlu0 %1949 }
 0x869   :  { %v1951_v31 = vsel %vm56_vm1, %v1950_v9, %v1944_v59 }
 0x86a   :  { %1952 = vrot.lane.b32.xlu0 %v1951_v31, %s2388_s15  ;;  %v1968_v28 = vpop.permute.xlu1 %1967 }
 0x86b   :  { %v1969_v40 = vsel %vm56_vm1, %v1968_v28, %v1965_v55 }
 0x86c   :  { %1970 = vrot.lane.b32.xlu1 %v1969_v40, %s2388_s15  ;;  %s2001_s15 = sshll.u32 %s2398_s7, 4  ;;  %s2002_s15 = int_to_ptr.vmem [resolvable:$true] %s2001_s15 }
 0x86d   :  { %p2370_p1 = scmp.lt.s32.totalorder %s2002_s15, %s2002_s15 }
 0x870   :  { %1984 = vperm.xlu1 %2362, %v1948_v7  }
 0x8dc   :  { %v1953_v8 = vpop.permute.xlu0 %1952 }
 0x8dd   :  { %v1954_v11 = vsel %vm56_vm1, %v1953_v8, %v1944_v59 }
 0x8de   :  { %1956 = vrot.lane.b32.xlu0 %v1954_v11, %s2395_s23  ;;  %v1971_v6 = vpop.permute.xlu1 %1970  ;;  %s2365_s23 = scalar_lea.vmem %s2002_s15, 16 }
 0x8df   :  { %v1972_v30 = vsel %vm56_vm1, %v1971_v6, %v1965_v55  ;;  %p2366_p0 = scmp.ne.s32.totalorder %s2002_s15, %s2365_s23 }
 0x8e2   :  { %1974 = vrot.lane.b32.xlu0 %v1972_v30, %s2396_s26  ;;  %s2369_s26 = scalar_lea.vmem %s2002_s15, 32 }
 0x8e3   :  { %p2371_p2 = scmp.lt.s32.totalorder %s2369_s26, %s2365_s23 }
 0x8e5   :  { %p2372_p3 = por %p2371_p2, %p2370_p1 }
 0x8e7   :  { %p2373_p4 = pnand %p2372_p3, %p2366_p0 }
 0x8eb   :  { %v1985_v52 = vpop.permute.xlu1 %1984 }
 0x8ec   :  { %v1990_v62 = vrot.slane %v1985_v52, %v3588_v43 }
 0x950   :  { %v1957_v48 = vpop.permute.xlu0 %1956 }
 0x951   :  { %v1959_v2 = vmul.f32 %v2509_v29, %v1957_v48 }
 0x953   :  { %v1961_v60 = vrot.slane %v1959_v2, 7 }
 0x954   :  { %v1975_v15 = vpop.permute.xlu0 %1974 }
 0x955   :  { %v1977_v57 = vmul.f32 %v2469_v10, %v1975_v15  ;;  %v1963_v49 = vadd.f32 %v1961_v60, %v1944_v59 }
 0x957   :  { %v1979_v32 = vrot.slane %v1977_v57, 7 }
 0x959   :  { %v1981_v4 = vadd.f32 %v1979_v32, %v1963_v49 }
 0x95b   :  { %v1991_v14 = vadd.f32 %v1990_v62, %v1981_v4 }
 0x95d   :  { %2363 = vtanh.f32 %v1991_v14 }
 0x96a   :  { %v2364_v39 = vpop.eup %2363 }
 0x96b   :  { %1994 = vst.msk [vmem:[#allocation3 - $0x1] sm:$0x2] %vm1993_vm5, %v2364_v39 }
 0x96c   :  { %2376 = shalt.err (!%p2373_p4)
}
 0x96d   :  { %2004 = dma.vmem_to_hbm [thread:$0]  %s2002_s15, 16, %s3576_s9, [#allocation4]  }
 0x96e   :  { %2385 = dma.done.wait [#allocation4], 16  }
 0x96f   :  { %2386 = vsyncadd [#allocation4], 4294967280 }
 0x970   :  { %2008 = vsyncpa [#allocation4], 1 }

</bundles_post_ra>
